<compile_context>
chip_gen: v6e
topology: v6e:2x2x1
jax: 0.10.0
libtpu: 0.0.40
codegen_flags: <defaults>
</compile_context>

<pallas_src>
import functools

import numpy as np
import jax
import jax.numpy as jnp
from jax.experimental import pallas as pl
from jax.experimental.pallas import tpu as pltpu


def _gaussian_taps(kernel_size, sigma):
    """Same formula as torchvision._get_gaussian_kernel1d, as Python floats."""
    half = (kernel_size - 1) * 0.5
    x = np.linspace(-half, half, kernel_size)
    pdf = np.exp(-0.5 * (x / float(sigma)) ** 2)
    pdf = pdf / pdf.sum()
    return tuple(float(v) for v in pdf)


def _reflect(i, n):
    """Reflect index (exclude-edge, torch 'reflect' / np 'reflect') -- compile time."""
    if i < 0:
        return -i
    if i >= n:
        return 2 * (n - 1) - i
    return i


def _blur_kernel(x_ref, o_ref, buf, *, taps, pad):
    """Separable reflect-padded Gaussian blur of one block of image planes.

    x_ref : VMEM (PB, H, W)               input planes (W on lanes, H on sublanes)
    o_ref : VMEM (PB, H, W)               blurred output
    buf   : VMEM (PB, H, W + 2*pad) f32   W-reflect-padded vertical-pass result
    """
    PB, H, W = x_ref.shape
    K = len(taps)
    f32 = jnp.float32

    # ---------- vertical pass (reflect along H, sublane-axis shifts) ----------
    # Interior output rows [pad, H-pad): every tap's source row is in range, so
    # accumulate K sublane-shifted windows read directly from x_ref (no
    # H-padded scratch copy).
    Hi = H - 2 * pad
    if Hi > 0:
        acc = taps[0] * x_ref[:, 0:Hi, :].astype(f32)
        for i in range(1, K):                       # static unroll, taps are constants
            acc = acc + taps[i] * x_ref[:, i:i + Hi, :].astype(f32)
        buf[:, pad:pad + Hi, pad:pad + W] = acc

    # Boundary output rows: small per-row weighted sums with reflected sources.
    boundary_rows = sorted(set(range(min(pad, H))) | set(range(max(H - pad, 0), H)))
    for h in boundary_rows:
        r = _reflect(h - pad, H)
        row = taps[0] * x_ref[:, r:r + 1, :].astype(f32)
        for i in range(1, K):
            r = _reflect(h + i - pad, H)
            row = row + taps[i] * x_ref[:, r:r + 1, :].astype(f32)
        buf[:, h:h + 1, pad:pad + W] = row

    # ---------- reflect halo columns of buf (along W / lane axis) ----------
    for p in range(pad):
        # left halo column p mirrors interior column (pad - p)
        src_l = 2 * pad - p
        buf[:, :, p:p + 1] = buf[:, :, src_l:src_l + 1]
        # right halo column pad+W+p mirrors interior column (W - 2 - p)
        dst_r = pad + W + p
        src_r = pad + W - 2 - p
        buf[:, :, dst_r:dst_r + 1] = buf[:, :, src_r:src_r + 1]

    # ---------- horizontal pass (reflect along W, lane-axis shifts) ----------
    out = taps[0] * buf[:, :, 0:W]
    for j in range(1, K):
        out = out + taps[j] * buf[:, :, j:j + W]

    if jnp.issubdtype(o_ref.dtype, jnp.integer):
        info = jnp.iinfo(o_ref.dtype)
        out = jnp.clip(jnp.round(out), info.min, info.max)
    o_ref[...] = out.astype(o_ref.dtype)


def _vmem_capacity_bytes():
    try:
        cap = getattr(pltpu.get_tpu_info(), "vmem_capacity_bytes", None)
        if cap:
            return int(cap)
    except Exception:
        pass
    return 64 * 1024 * 1024          # conservative fallback (v7x physical VMEM)


def _num_tensorcores():
    try:
        info = pltpu.get_tpu_info()
        for name in ("num_cores", "num_tensorcores", "tensorcore_count", "cores_per_chip"):
            v = getattr(info, name, None)
            if isinstance(v, (int, np.integer)) and int(v) >= 1:
                return int(v)
    except Exception:
        pass
    try:
        v = getattr(jax.devices()[0], "num_cores", None)
        if isinstance(v, (int, np.integer)) and int(v) >= 1:
            return int(v)
    except Exception:
        pass
    return 1


def _choose_plane_block(NC, H, W, pad, dtype):
    """Largest plane block whose per-step VMEM footprint fits the budget."""
    itemsize = jnp.dtype(dtype).itemsize
    Wp = W + 2 * pad
    per_plane = (2 * H * W * itemsize          # double-buffered input block
                 + 2 * H * W * itemsize        # double-buffered output block
                 + H * Wp * 4                  # f32 scratch (W-padded vertical result)
                 + 4 * H * W * 4)              # live f32 temporaries inside the body
    cap = _vmem_capacity_bytes()
    budget = int(cap * 0.70)
    pb = int(max(1, min(NC, budget // per_plane)))
    # Only force >= 2 grid steps on chips with 2 TensorCores (v7x); on 1-TC
    # parts (v5e/v6e) splitting only adds per-step overhead and halves DMA size.
    if _num_tensorcores() >= 2 and pb >= NC and NC >= 2:
        pb = (NC + 1) // 2
    grid_n = int(pl.cdiv(NC, pb))
    vmem_limit = int(min(cap * 9 // 10, max(2 * per_plane * pb + (4 << 20), 32 << 20)))
    return pb, grid_n, vmem_limit


def gaussian_blur(x: jnp.ndarray, kernel_size: int, sigma: float) -> jnp.ndarray:
    """Depthwise Gaussian blur of an NCHW image, reflect-padded, same size."""
    if x.ndim != 4:
        raise ValueError("expected NCHW input")
    N, C, H, W = x.shape
    K = int(kernel_size)
    if K < 1 or K % 2 != 1:
        raise ValueError("kernel_size must be a positive odd integer")
    pad = K // 2
    if pad > H - 1 or pad > W - 1:
        raise ValueError("reflect padding requires kernel_size // 2 <= min(H, W) - 1")

    taps = _gaussian_taps(K, sigma)            # compile-time Python floats

    NC = N * C
    x3 = x.reshape(NC, H, W)                   # metadata-only reshape, no HBM pass

    PB, grid_n, vmem_limit = _choose_plane_block(NC, H, W, pad, x.dtype)

    kernel = functools.partial(_blur_kernel, taps=taps, pad=pad)

    # If grid_n * PB > NC the last block is ragged: Pallas masks OOB output
    # writes and the kernel never mixes data across the plane axis, so any
    # padded garbage planes cannot contaminate valid planes.
    out = pl.pallas_call(
        kernel,
        out_shape=jax.ShapeDtypeStruct((NC, H, W), x.dtype),
        grid=(grid_n,),
        in_specs=[pl.BlockSpec((PB, H, W), lambda g: (g, 0, 0))],
        out_specs=pl.BlockSpec((PB, H, W), lambda g: (g, 0, 0)),
        scratch_shapes=[pltpu.VMEM((PB, H, W + 2 * pad), jnp.float32)],
        compiler_params=pltpu.CompilerParams(
            dimension_semantics=("parallel",),
            vmem_limit_bytes=vmem_limit),
    )(x3)

    return out.reshape(N, C, H, W)


class GaussianFilter:
    """Mirrors noise_layers/gaussian.py::GaussianFilter forward semantics."""

    def __init__(self, kernel_size: int, sigma: float):
        self.kernel_size = kernel_size
        self.sigma = sigma

    def __call__(self, noised_and_cover):
        noised_image = noised_and_cover[0]
        noised_and_cover[0] = gaussian_blur(noised_image, self.kernel_size, self.sigma)
        return noised_and_cover


def _reference_blur(x, kernel_size, sigma):
    """Independent reference: depthwise conv2d with explicit reflect padding."""
    N, C, H, W = x.shape
    K = kernel_size
    pad = K // 2
    w1d = jnp.asarray(_gaussian_taps(K, sigma), jnp.float32)
    k2d = jnp.outer(w1d, w1d)
    kern = jnp.broadcast_to(k2d, (C, 1, K, K))  # OIHW, groups=C
    xp = jnp.pad(x, ((0, 0), (0, 0), (pad, pad), (pad, pad)), mode="reflect")
    return jax.lax.conv_general_dilated(
        xp, kern, window_strides=(1, 1), padding="VALID",
        feature_group_count=C,
        dimension_numbers=("NCHW", "OIHW", "NCHW"))


if __name__ == "__main__":
    key = jax.random.PRNGKey(0)
    k_noised, k_cover = jax.random.split(key)

    N, C, H, W = 2, 4, 16, 16
    noised = jax.random.normal(k_noised, (N, C, H, W), dtype=jnp.float32)
    cover = jax.random.normal(k_cover, (N, C, H, W), dtype=jnp.float32)

    kernel_size, sigma = 5, 1.0
    layer = GaussianFilter(kernel_size=kernel_size, sigma=sigma)

    noised_and_cover = [noised, cover]
    out = layer(noised_and_cover)
    blurred = jax.block_until_ready(out[0])

    ref = jax.block_until_ready(_reference_blur(noised, kernel_size, sigma))
    assert blurred.shape == (N, C, H, W)
    assert jnp.allclose(blurred, ref, atol=1e-5, rtol=1e-5), "mismatch vs reference"
    assert jnp.array_equal(out[1], cover)  # cover element untouched

    print("KERNEL_OK")
</pallas_src>

<mosaic_0001>
module attributes {stable_mosaic.version = 11 : i64} {
  func.func @_blur_kernel(%arg0: i32, %arg1: memref<8x16x16xf32, #tpu.memory_space<vmem>>, %arg2: memref<8x16x16xf32, #tpu.memory_space<vmem>>, %arg3: memref<8x16x20xf32, #tpu.memory_space<vmem>>) attributes {dimension_semantics = [#tpu.dimension_semantics<parallel>], iteration_bounds = array<i64: 1>, scalar_prefetch = 0 : i64, scratch_operands = 1 : i64, tpu.core_type = #tpu.core_type<tc>, window_params = [{transform_indices = @transform_0, window_bounds = array<i64: 8, 16, 16>}, {transform_indices = @transform_1, window_bounds = array<i64: 8, 16, 16>}]} {
    %c0 = arith.constant 0 : index
    %c0_0 = arith.constant 0 : index
    %c0_1 = arith.constant 0 : index
    %0 = vector.load %arg1[%c0, %c0_0, %c0_1] : memref<8x16x16xf32, #tpu.memory_space<vmem>>, vector<8x12x16xf32>
    %cst = arith.constant 0.054488685 : f32
    %1 = vector.broadcast %cst : f32 to vector<8x12x16xf32>
    %2 = arith.mulf %1, %0 : vector<8x12x16xf32>
    %c0_2 = arith.constant 0 : index
    %c1 = arith.constant 1 : index
    %c0_3 = arith.constant 0 : index
    %3 = vector.load %arg1[%c0_2, %c1, %c0_3] : memref<8x16x16xf32, #tpu.memory_space<vmem>>, vector<8x12x16xf32>
    %cst_4 = arith.constant 0.244201347 : f32
    %4 = vector.broadcast %cst_4 : f32 to vector<8x12x16xf32>
    %5 = arith.mulf %4, %3 : vector<8x12x16xf32>
    %6 = arith.addf %2, %5 : vector<8x12x16xf32>
    %c0_5 = arith.constant 0 : index
    %c2 = arith.constant 2 : index
    %c0_6 = arith.constant 0 : index
    %7 = vector.load %arg1[%c0_5, %c2, %c0_6] : memref<8x16x16xf32, #tpu.memory_space<vmem>>, vector<8x12x16xf32>
    %cst_7 = arith.constant 0.402619958 : f32
    %8 = vector.broadcast %cst_7 : f32 to vector<8x12x16xf32>
    %9 = arith.mulf %8, %7 : vector<8x12x16xf32>
    %10 = arith.addf %6, %9 : vector<8x12x16xf32>
    %c0_8 = arith.constant 0 : index
    %c3 = arith.constant 3 : index
    %c0_9 = arith.constant 0 : index
    %11 = vector.load %arg1[%c0_8, %c3, %c0_9] : memref<8x16x16xf32, #tpu.memory_space<vmem>>, vector<8x12x16xf32>
    %cst_10 = arith.constant 0.244201347 : f32
    %12 = vector.broadcast %cst_10 : f32 to vector<8x12x16xf32>
    %13 = arith.mulf %12, %11 : vector<8x12x16xf32>
    %14 = arith.addf %10, %13 : vector<8x12x16xf32>
    %c0_11 = arith.constant 0 : index
    %c4 = arith.constant 4 : index
    %c0_12 = arith.constant 0 : index
    %15 = vector.load %arg1[%c0_11, %c4, %c0_12] : memref<8x16x16xf32, #tpu.memory_space<vmem>>, vector<8x12x16xf32>
    %cst_13 = arith.constant 0.054488685 : f32
    %16 = vector.broadcast %cst_13 : f32 to vector<8x12x16xf32>
    %17 = arith.mulf %16, %15 : vector<8x12x16xf32>
    %18 = arith.addf %14, %17 : vector<8x12x16xf32>
    %c0_14 = arith.constant 0 : index
    %c2_15 = arith.constant 2 : index
    %c2_16 = arith.constant 2 : index
    %19 = vector.load %arg3[%c0_14, %c2_15, %c2_16] : memref<8x16x20xf32, #tpu.memory_space<vmem>>, vector<8x12x16xf32>
    tpu.vector_store %arg3[%c0_14, %c2_15, %c2_16], %18 {strides = array<i32>} : memref<8x16x20xf32, #tpu.memory_space<vmem>>, vector<8x12x16xf32>,
    %c0_17 = arith.constant 0 : index
    %c2_18 = arith.constant 2 : index
    %c0_19 = arith.constant 0 : index
    %20 = vector.load %arg1[%c0_17, %c2_18, %c0_19] : memref<8x16x16xf32, #tpu.memory_space<vmem>>, vector<8x1x16xf32>
    %cst_20 = arith.constant 0.054488685 : f32
    %21 = vector.broadcast %cst_20 : f32 to vector<8x1x16xf32>
    %22 = arith.mulf %21, %20 : vector<8x1x16xf32>
    %c0_21 = arith.constant 0 : index
    %c1_22 = arith.constant 1 : index
    %c0_23 = arith.constant 0 : index
    %23 = vector.load %arg1[%c0_21, %c1_22, %c0_23] : memref<8x16x16xf32, #tpu.memory_space<vmem>>, vector<8x1x16xf32>
    %cst_24 = arith.constant 0.244201347 : f32
    %24 = vector.broadcast %cst_24 : f32 to vector<8x1x16xf32>
    %25 = arith.mulf %24, %23 : vector<8x1x16xf32>
    %26 = arith.addf %22, %25 : vector<8x1x16xf32>
    %c0_25 = arith.constant 0 : index
    %c0_26 = arith.constant 0 : index
    %c0_27 = arith.constant 0 : index
    %27 = vector.load %arg1[%c0_25, %c0_26, %c0_27] : memref<8x16x16xf32, #tpu.memory_space<vmem>>, vector<8x1x16xf32>
    %cst_28 = arith.constant 0.402619958 : f32
    %28 = vector.broadcast %cst_28 : f32 to vector<8x1x16xf32>
    %29 = arith.mulf %28, %27 : vector<8x1x16xf32>
    %30 = arith.addf %26, %29 : vector<8x1x16xf32>
    %c0_29 = arith.constant 0 : index
    %c1_30 = arith.constant 1 : index
    %c0_31 = arith.constant 0 : index
    %31 = vector.load %arg1[%c0_29, %c1_30, %c0_31] : memref<8x16x16xf32, #tpu.memory_space<vmem>>, vector<8x1x16xf32>
    %cst_32 = arith.constant 0.244201347 : f32
    %32 = vector.broadcast %cst_32 : f32 to vector<8x1x16xf32>
    %33 = arith.mulf %32, %31 : vector<8x1x16xf32>
    %34 = arith.addf %30, %33 : vector<8x1x16xf32>
    %c0_33 = arith.constant 0 : index
    %c2_34 = arith.constant 2 : index
    %c0_35 = arith.constant 0 : index
    %35 = vector.load %arg1[%c0_33, %c2_34, %c0_35] : memref<8x16x16xf32, #tpu.memory_space<vmem>>, vector<8x1x16xf32>
    %cst_36 = arith.constant 0.054488685 : f32
    %36 = vector.broadcast %cst_36 : f32 to vector<8x1x16xf32>
    %37 = arith.mulf %36, %35 : vector<8x1x16xf32>
    %38 = arith.addf %34, %37 : vector<8x1x16xf32>
    %c0_37 = arith.constant 0 : index
    %c0_38 = arith.constant 0 : index
    %c2_39 = arith.constant 2 : index
    %39 = vector.load %arg3[%c0_37, %c0_38, %c2_39] : memref<8x16x20xf32, #tpu.memory_space<vmem>>, vector<8x1x16xf32>
    tpu.vector_store %arg3[%c0_37, %c0_38, %c2_39], %38 {strides = array<i32>} : memref<8x16x20xf32, #tpu.memory_space<vmem>>, vector<8x1x16xf32>,
    %c0_40 = arith.constant 0 : index
    %c1_41 = arith.constant 1 : index
    %c0_42 = arith.constant 0 : index
    %40 = vector.load %arg1[%c0_40, %c1_41, %c0_42] : memref<8x16x16xf32, #tpu.memory_space<vmem>>, vector<8x1x16xf32>
    %cst_43 = arith.constant 0.054488685 : f32
    %41 = vector.broadcast %cst_43 : f32 to vector<8x1x16xf32>
    %42 = arith.mulf %41, %40 : vector<8x1x16xf32>
    %c0_44 = arith.constant 0 : index
    %c0_45 = arith.constant 0 : index
    %c0_46 = arith.constant 0 : index
    %43 = vector.load %arg1[%c0_44, %c0_45, %c0_46] : memref<8x16x16xf32, #tpu.memory_space<vmem>>, vector<8x1x16xf32>
    %cst_47 = arith.constant 0.244201347 : f32
    %44 = vector.broadcast %cst_47 : f32 to vector<8x1x16xf32>
    %45 = arith.mulf %44, %43 : vector<8x1x16xf32>
    %46 = arith.addf %42, %45 : vector<8x1x16xf32>
    %c0_48 = arith.constant 0 : index
    %c1_49 = arith.constant 1 : index
    %c0_50 = arith.constant 0 : index
    %47 = vector.load %arg1[%c0_48, %c1_49, %c0_50] : memref<8x16x16xf32, #tpu.memory_space<vmem>>, vector<8x1x16xf32>
    %cst_51 = arith.constant 0.402619958 : f32
    %48 = vector.broadcast %cst_51 : f32 to vector<8x1x16xf32>
    %49 = arith.mulf %48, %47 : vector<8x1x16xf32>
    %50 = arith.addf %46, %49 : vector<8x1x16xf32>
    %c0_52 = arith.constant 0 : index
    %c2_53 = arith.constant 2 : index
    %c0_54 = arith.constant 0 : index
    %51 = vector.load %arg1[%c0_52, %c2_53, %c0_54] : memref<8x16x16xf32, #tpu.memory_space<vmem>>, vector<8x1x16xf32>
    %cst_55 = arith.constant 0.244201347 : f32
    %52 = vector.broadcast %cst_55 : f32 to vector<8x1x16xf32>
    %53 = arith.mulf %52, %51 : vector<8x1x16xf32>
    %54 = arith.addf %50, %53 : vector<8x1x16xf32>
    %c0_56 = arith.constant 0 : index
    %c3_57 = arith.constant 3 : index
    %c0_58 = arith.constant 0 : index
    %55 = vector.load %arg1[%c0_56, %c3_57, %c0_58] : memref<8x16x16xf32, #tpu.memory_space<vmem>>, vector<8x1x16xf32>
    %cst_59 = arith.constant 0.054488685 : f32
    %56 = vector.broadcast %cst_59 : f32 to vector<8x1x16xf32>
    %57 = arith.mulf %56, %55 : vector<8x1x16xf32>
    %58 = arith.addf %54, %57 : vector<8x1x16xf32>
    %c0_60 = arith.constant 0 : index
    %c1_61 = arith.constant 1 : index
    %c2_62 = arith.constant 2 : index
    %59 = vector.load %arg3[%c0_60, %c1_61, %c2_62] : memref<8x16x20xf32, #tpu.memory_space<vmem>>, vector<8x1x16xf32>
    tpu.vector_store %arg3[%c0_60, %c1_61, %c2_62], %58 {strides = array<i32>} : memref<8x16x20xf32, #tpu.memory_space<vmem>>, vector<8x1x16xf32>,
    %c0_63 = arith.constant 0 : index
    %c12 = arith.constant 12 : index
    %c0_64 = arith.constant 0 : index
    %60 = vector.load %arg1[%c0_63, %c12, %c0_64] : memref<8x16x16xf32, #tpu.memory_space<vmem>>, vector<8x1x16xf32>
    %cst_65 = arith.constant 0.054488685 : f32
    %61 = vector.broadcast %cst_65 : f32 to vector<8x1x16xf32>
    %62 = arith.mulf %61, %60 : vector<8x1x16xf32>
    %c0_66 = arith.constant 0 : index
    %c13 = arith.constant 13 : index
    %c0_67 = arith.constant 0 : index
    %63 = vector.load %arg1[%c0_66, %c13, %c0_67] : memref<8x16x16xf32, #tpu.memory_space<vmem>>, vector<8x1x16xf32>
    %cst_68 = arith.constant 0.244201347 : f32
    %64 = vector.broadcast %cst_68 : f32 to vector<8x1x16xf32>
    %65 = arith.mulf %64, %63 : vector<8x1x16xf32>
    %66 = arith.addf %62, %65 : vector<8x1x16xf32>
    %c0_69 = arith.constant 0 : index
    %c14 = arith.constant 14 : index
    %c0_70 = arith.constant 0 : index
    %67 = vector.load %arg1[%c0_69, %c14, %c0_70] : memref<8x16x16xf32, #tpu.memory_space<vmem>>, vector<8x1x16xf32>
    %cst_71 = arith.constant 0.402619958 : f32
    %68 = vector.broadcast %cst_71 : f32 to vector<8x1x16xf32>
    %69 = arith.mulf %68, %67 : vector<8x1x16xf32>
    %70 = arith.addf %66, %69 : vector<8x1x16xf32>
    %c0_72 = arith.constant 0 : index
    %c15 = arith.constant 15 : index
    %c0_73 = arith.constant 0 : index
    %71 = vector.load %arg1[%c0_72, %c15, %c0_73] : memref<8x16x16xf32, #tpu.memory_space<vmem>>, vector<8x1x16xf32>
    %cst_74 = arith.constant 0.244201347 : f32
    %72 = vector.broadcast %cst_74 : f32 to vector<8x1x16xf32>
    %73 = arith.mulf %72, %71 : vector<8x1x16xf32>
    %74 = arith.addf %70, %73 : vector<8x1x16xf32>
    %c0_75 = arith.constant 0 : index
    %c14_76 = arith.constant 14 : index
    %c0_77 = arith.constant 0 : index
    %75 = vector.load %arg1[%c0_75, %c14_76, %c0_77] : memref<8x16x16xf32, #tpu.memory_space<vmem>>, vector<8x1x16xf32>
    %cst_78 = arith.constant 0.054488685 : f32
    %76 = vector.broadcast %cst_78 : f32 to vector<8x1x16xf32>
    %77 = arith.mulf %76, %75 : vector<8x1x16xf32>
    %78 = arith.addf %74, %77 : vector<8x1x16xf32>
    %c0_79 = arith.constant 0 : index
    %c14_80 = arith.constant 14 : index
    %c2_81 = arith.constant 2 : index
    %79 = vector.load %arg3[%c0_79, %c14_80, %c2_81] : memref<8x16x20xf32, #tpu.memory_space<vmem>>, vector<8x1x16xf32>
    tpu.vector_store %arg3[%c0_79, %c14_80, %c2_81], %78 {strides = array<i32>} : memref<8x16x20xf32, #tpu.memory_space<vmem>>, vector<8x1x16xf32>,
    %c0_82 = arith.constant 0 : index
    %c13_83 = arith.constant 13 : index
    %c0_84 = arith.constant 0 : index
    %80 = vector.load %arg1[%c0_82, %c13_83, %c0_84] : memref<8x16x16xf32, #tpu.memory_space<vmem>>, vector<8x1x16xf32>
    %cst_85 = arith.constant 0.054488685 : f32
    %81 = vector.broadcast %cst_85 : f32 to vector<8x1x16xf32>
    %82 = arith.mulf %81, %80 : vector<8x1x16xf32>
    %c0_86 = arith.constant 0 : index
    %c14_87 = arith.constant 14 : index
    %c0_88 = arith.constant 0 : index
    %83 = vector.load %arg1[%c0_86, %c14_87, %c0_88] : memref<8x16x16xf32, #tpu.memory_space<vmem>>, vector<8x1x16xf32>
    %cst_89 = arith.constant 0.244201347 : f32
    %84 = vector.broadcast %cst_89 : f32 to vector<8x1x16xf32>
    %85 = arith.mulf %84, %83 : vector<8x1x16xf32>
    %86 = arith.addf %82, %85 : vector<8x1x16xf32>
    %c0_90 = arith.constant 0 : index
    %c15_91 = arith.constant 15 : index
    %c0_92 = arith.constant 0 : index
    %87 = vector.load %arg1[%c0_90, %c15_91, %c0_92] : memref<8x16x16xf32, #tpu.memory_space<vmem>>, vector<8x1x16xf32>
    %cst_93 = arith.constant 0.402619958 : f32
    %88 = vector.broadcast %cst_93 : f32 to vector<8x1x16xf32>
    %89 = arith.mulf %88, %87 : vector<8x1x16xf32>
    %90 = arith.addf %86, %89 : vector<8x1x16xf32>
    %c0_94 = arith.constant 0 : index
    %c14_95 = arith.constant 14 : index
    %c0_96 = arith.constant 0 : index
    %91 = vector.load %arg1[%c0_94, %c14_95, %c0_96] : memref<8x16x16xf32, #tpu.memory_space<vmem>>, vector<8x1x16xf32>
    %cst_97 = arith.constant 0.244201347 : f32
    %92 = vector.broadcast %cst_97 : f32 to vector<8x1x16xf32>
    %93 = arith.mulf %92, %91 : vector<8x1x16xf32>
    %94 = arith.addf %90, %93 : vector<8x1x16xf32>
    %c0_98 = arith.constant 0 : index
    %c13_99 = arith.constant 13 : index
    %c0_100 = arith.constant 0 : index
    %95 = vector.load %arg1[%c0_98, %c13_99, %c0_100] : memref<8x16x16xf32, #tpu.memory_space<vmem>>, vector<8x1x16xf32>
    %cst_101 = arith.constant 0.054488685 : f32
    %96 = vector.broadcast %cst_101 : f32 to vector<8x1x16xf32>
    %97 = arith.mulf %96, %95 : vector<8x1x16xf32>
    %98 = arith.addf %94, %97 : vector<8x1x16xf32>
    %c0_102 = arith.constant 0 : index
    %c15_103 = arith.constant 15 : index
    %c2_104 = arith.constant 2 : index
    %99 = vector.load %arg3[%c0_102, %c15_103, %c2_104] : memref<8x16x20xf32, #tpu.memory_space<vmem>>, vector<8x1x16xf32>
    tpu.vector_store %arg3[%c0_102, %c15_103, %c2_104], %98 {strides = array<i32>} : memref<8x16x20xf32, #tpu.memory_space<vmem>>, vector<8x1x16xf32>,
    %c0_105 = arith.constant 0 : index
    %c0_106 = arith.constant 0 : index
    %c4_107 = arith.constant 4 : index
    %100 = vector.load %arg3[%c0_105, %c0_106, %c4_107] : memref<8x16x20xf32, #tpu.memory_space<vmem>>, vector<8x16x1xf32>
    %c0_108 = arith.constant 0 : index
    %c0_109 = arith.constant 0 : index
    %c0_110 = arith.constant 0 : index
    %101 = vector.load %arg3[%c0_108, %c0_109, %c0_110] : memref<8x16x20xf32, #tpu.memory_space<vmem>>, vector<8x16x1xf32>
    tpu.vector_store %arg3[%c0_108, %c0_109, %c0_110], %100 {strides = array<i32>} : memref<8x16x20xf32, #tpu.memory_space<vmem>>, vector<8x16x1xf32>,
    %c0_111 = arith.constant 0 : index
    %c0_112 = arith.constant 0 : index
    %c16 = arith.constant 16 : index
    %102 = vector.load %arg3[%c0_111, %c0_112, %c16] : memref<8x16x20xf32, #tpu.memory_space<vmem>>, vector<8x16x1xf32>
    %c0_113 = arith.constant 0 : index
    %c0_114 = arith.constant 0 : index
    %c18 = arith.constant 18 : index
    %103 = vector.load %arg3[%c0_113, %c0_114, %c18] : memref<8x16x20xf32, #tpu.memory_space<vmem>>, vector<8x16x1xf32>
    tpu.vector_store %arg3[%c0_113, %c0_114, %c18], %102 {strides = array<i32>} : memref<8x16x20xf32, #tpu.memory_space<vmem>>, vector<8x16x1xf32>,
    %c0_115 = arith.constant 0 : index
    %c0_116 = arith.constant 0 : index
    %c3_117 = arith.constant 3 : index
    %104 = vector.load %arg3[%c0_115, %c0_116, %c3_117] : memref<8x16x20xf32, #tpu.memory_space<vmem>>, vector<8x16x1xf32>
    %c0_118 = arith.constant 0 : index
    %c0_119 = arith.constant 0 : index
    %c1_120 = arith.constant 1 : index
    %105 = vector.load %arg3[%c0_118, %c0_119, %c1_120] : memref<8x16x20xf32, #tpu.memory_space<vmem>>, vector<8x16x1xf32>
    tpu.vector_store %arg3[%c0_118, %c0_119, %c1_120], %104 {strides = array<i32>} : memref<8x16x20xf32, #tpu.memory_space<vmem>>, vector<8x16x1xf32>,
    %c0_121 = arith.constant 0 : index
    %c0_122 = arith.constant 0 : index
    %c15_123 = arith.constant 15 : index
    %106 = vector.load %arg3[%c0_121, %c0_122, %c15_123] : memref<8x16x20xf32, #tpu.memory_space<vmem>>, vector<8x16x1xf32>
    %c0_124 = arith.constant 0 : index
    %c0_125 = arith.constant 0 : index
    %c19 = arith.constant 19 : index
    %107 = vector.load %arg3[%c0_124, %c0_125, %c19] : memref<8x16x20xf32, #tpu.memory_space<vmem>>, vector<8x16x1xf32>
    tpu.vector_store %arg3[%c0_124, %c0_125, %c19], %106 {strides = array<i32>} : memref<8x16x20xf32, #tpu.memory_space<vmem>>, vector<8x16x1xf32>,
    %c0_126 = arith.constant 0 : index
    %c0_127 = arith.constant 0 : index
    %c0_128 = arith.constant 0 : index
    %108 = vector.load %arg3[%c0_126, %c0_127, %c0_128] : memref<8x16x20xf32, #tpu.memory_space<vmem>>, vector<8x16x16xf32>
    %cst_129 = arith.constant 0.054488685 : f32
    %109 = vector.broadcast %cst_129 : f32 to vector<8x16x16xf32>
    %110 = arith.mulf %109, %108 : vector<8x16x16xf32>
    %c0_130 = arith.constant 0 : index
    %c0_131 = arith.constant 0 : index
    %c1_132 = arith.constant 1 : index
    %111 = vector.load %arg3[%c0_130, %c0_131, %c1_132] : memref<8x16x20xf32, #tpu.memory_space<vmem>>, vector<8x16x16xf32>
    %cst_133 = arith.constant 0.244201347 : f32
    %112 = vector.broadcast %cst_133 : f32 to vector<8x16x16xf32>
    %113 = arith.mulf %112, %111 : vector<8x16x16xf32>
    %114 = arith.addf %110, %113 : vector<8x16x16xf32>
    %c0_134 = arith.constant 0 : index
    %c0_135 = arith.constant 0 : index
    %c2_136 = arith.constant 2 : index
    %115 = vector.load %arg3[%c0_134, %c0_135, %c2_136] : memref<8x16x20xf32, #tpu.memory_space<vmem>>, vector<8x16x16xf32>
    %cst_137 = arith.constant 0.402619958 : f32
    %116 = vector.broadcast %cst_137 : f32 to vector<8x16x16xf32>
    %117 = arith.mulf %116, %115 : vector<8x16x16xf32>
    %118 = arith.addf %114, %117 : vector<8x16x16xf32>
    %c0_138 = arith.constant 0 : index
    %c0_139 = arith.constant 0 : index
    %c3_140 = arith.constant 3 : index
    %119 = vector.load %arg3[%c0_138, %c0_139, %c3_140] : memref<8x16x20xf32, #tpu.memory_space<vmem>>, vector<8x16x16xf32>
    %cst_141 = arith.constant 0.244201347 : f32
    %120 = vector.broadcast %cst_141 : f32 to vector<8x16x16xf32>
    %121 = arith.mulf %120, %119 : vector<8x16x16xf32>
    %122 = arith.addf %118, %121 : vector<8x16x16xf32>
    %c0_142 = arith.constant 0 : index
    %c0_143 = arith.constant 0 : index
    %c4_144 = arith.constant 4 : index
    %123 = vector.load %arg3[%c0_142, %c0_143, %c4_144] : memref<8x16x20xf32, #tpu.memory_space<vmem>>, vector<8x16x16xf32>
    %cst_145 = arith.constant 0.054488685 : f32
    %124 = vector.broadcast %cst_145 : f32 to vector<8x16x16xf32>
    %125 = arith.mulf %124, %123 : vector<8x16x16xf32>
    %126 = arith.addf %122, %125 : vector<8x16x16xf32>
    %c0_146 = arith.constant 0 : index
    %c0_147 = arith.constant 0 : index
    %c0_148 = arith.constant 0 : index
    %127 = vector.load %arg2[%c0_146, %c0_147, %c0_148] : memref<8x16x16xf32, #tpu.memory_space<vmem>>, vector<8x16x16xf32>
    tpu.vector_store %arg2[%c0_146, %c0_147, %c0_148], %126 {strides = array<i32>} : memref<8x16x16xf32, #tpu.memory_space<vmem>>, vector<8x16x16xf32>,
    return
  }
  func.func @transform_0(%arg0: i32) -> (i32, i32, i32) {
    %c0_i32 = arith.constant 0 : i32
    %c0_i32_0 = arith.constant 0 : i32
    %c0_i32_1 = arith.constant 0 : i32
    return %arg0, %c0_i32, %c0_i32_0 : i32, i32, i32
  }
  func.func @transform_1(%arg0: i32) -> (i32, i32, i32) {
    %c0_i32 = arith.constant 0 : i32
    %c0_i32_0 = arith.constant 0 : i32
    %c0_i32_1 = arith.constant 0 : i32
    return %arg0, %c0_i32, %c0_i32_0 : i32, i32, i32
  }
}

</mosaic_0001>

<bundles_post_ra>
// kernel: tpu_custom_call.1
= control target key start
LH: loop header
LB: loop body
LE: loop exit
PB: predicated region body
PF: predicated region fallthrough
CT: control target
= control target key end

     0   :  { %6 = vsyncpa [#allocation4], 0  ;;  %s2236_s0 = inlined_call_operand.hbm [shape: f32[8,16,16], index: 0, kind: input, shape index: {}]   ;;  %s2237_s1 = inlined_call_operand.hbm [shape: f32[8,16,16], index: 1, kind: output, shape index: {}]  }
   0x1   :  { %7 = vsyncpa [#allocation5], 0  ;;  %s1702_s6 = smov [#allocation3]  }
   0x2   :  { %s13_s7 = sshll.u32 %s1702_s6, 4  ;;  %s14_s7 = int_to_ptr.vmem [resolvable:$true] %s13_s7 }
   0x3   :  { %s1666_s8 = scalar_lea.vmem %s14_s7, 2048  ;;  %p1671_p1 = scmp.lt.s32.totalorder %s14_s7, %s14_s7 }
   0x4   :  { %p1667_p0 = scmp.ne.s32.totalorder %s14_s7, %s1666_s8  ;;  %p1672_p2 = scmp.lt.s32.totalorder %s1666_s8, %s1666_s8 }
   0x6   :  { %p1673_p3 = por %p1672_p2, %p1671_p1 }
   0x8   :  { %p1674_p4 = pnand %p1673_p3, %p1667_p0 }
   0xa   :  { %1677 = shalt.err (!%p1674_p4)
}
   0xb   :  { %s1703_s9 = smov 128   ;;  %s1704_s10 = smov 8  }
   0xc   :  { %19 = dma.hbm_to_vmem [thread:$0]  %s2236_s0, 2048, %s14_s7, [#allocation4], %s1703_s9, %s1703_s9, %s1704_s10  }
   0xd   :  { %1698 = dma.done.wait [#allocation4], 2048  }
   0xe   :  { %1699 = vsyncadd [#allocation4], 4294965248  ;;  %v25_v0 = vld [vmem:[#allocation3 + $0x10] sm:$0xff]  ;;  %v23_v8 = vld [vmem:[#allocation3] sm:$0xff]  ;;  %s1705_s0 = smov 2   ;;  %vm311_vm0 = vcmask 146448  }
   0xf   :  { %v57_v1 = vld [vmem:[#allocation3 + $0x11] sm:$0xff]  ;;  %v41_v3 = vmul.f32 0.054488685, %v25_v0  ;;  %v39_v11 = vmul.f32 0.054488685, %v23_v8  ;;  %v55_v13 = vld [vmem:[#allocation3 + $0x1] sm:$0xff] }
  0x10   :  { %v105_v2 = vld [vmem:[#allocation3 + $0x12] sm:$0xff]  ;;  %v73_v4 = vmul.f32 0.24420135, %v57_v1  ;;  %v103_v14 = vld [vmem:[#allocation3 + $0x2] sm:$0xff]  ;;  %v71_v17 = vmul.f32 0.24420135, %v55_v13 }
  0x11   :  { %v121_v5 = vmul.f32 0.40261996, %v105_v2  ;;  %v153_v6 = vld [vmem:[#allocation3 + $0x13] sm:$0xff]  ;;  %v151_v15 = vld [vmem:[#allocation3 + $0x3] sm:$0xff]  ;;  %v119_v18 = vmul.f32 0.40261996, %v103_v14 }
  0x12   :  { %v201_v7 = vld [vmem:[#allocation3 + $0x14] sm:$0xff]  ;;  %v89_v9 = vadd.f32 %v73_v4, %v41_v3  ;;  %v169_v10 = vmul.f32 0.24420135, %v153_v6  ;;  %v167_v19 = vmul.f32 0.24420135, %v151_v15  ;;  %v199_v20 = vld [vmem:[#allocation3 + $0x4] sm:$0xff]  ;;  %v87_v24 = vadd.f32 %v71_v17, %v39_v11 }
  0x13   :  { %v217_v12 = vmul.f32 0.054488685, %v201_v7  ;;  %v26_v21 = vld [vmem:[#allocation3 + $0x18] sm:$0xf]  ;;  %v215_v25 = vmul.f32 0.054488685, %v199_v20 }
  0x14   :  { %v137_v16 = vadd.f32 %v121_v5, %v89_v9  ;;  %v58_v22 = vld [vmem:[#allocation3 + $0x19] sm:$0xf]  ;;  %v42_v26 = vmul.f32 0.054488685, %v26_v21  ;;  %v135_v32 = vadd.f32 %v119_v18, %v87_v24  ;;  %v24_v35 = vld [vmem:[#allocation3 + $0x8] sm:$0xf] }
  0x15   :  { %v106_v27 = vld [vmem:[#allocation3 + $0x1a] sm:$0xf]  ;;  %v74_v28 = vmul.f32 0.24420135, %v58_v22  ;;  %v40_v38 = vmul.f32 0.054488685, %v24_v35 }
  0x16   :  { %v185_v23 = vadd.f32 %v169_v10, %v137_v16  ;;  %v122_v29 = vmul.f32 0.40261996, %v106_v27  ;;  %v154_v30 = vld [vmem:[#allocation3 + $0x1b] sm:$0xf]  ;;  %v56_v39 = vld [vmem:[#allocation3 + $0x9] sm:$0xf]  ;;  %v183_v40 = vadd.f32 %v167_v19, %v135_v32 }
  0x17   :  { %v170_v33 = vmul.f32 0.24420135, %v154_v30  ;;  %v202_v34 = vld [vmem:[#allocation3 + $0x1c] sm:$0xf]  ;;  %v90_v36 = vadd.f32 %v74_v28, %v42_v26  ;;  %v72_v41 = vmul.f32 0.24420135, %v56_v39 }
  0x18   :  { %v233_v31 = vadd.f32 %v217_v12, %v185_v23  ;;  %v218_v37 = vmul.f32 0.054488685, %v202_v34  ;;  %v104_v42 = vld [vmem:[#allocation3 + $0xa] sm:$0xf]  ;;  %v231_v48 = vadd.f32 %v215_v25, %v183_v40  ;;  %v27_v1 = vld [vmem:[#allocation3 + $0x20] sm:$0xff]  ;;  %v29_v12 = vld [vmem:[#allocation3 + $0x30] sm:$0xff] }
  0x19   :  { %v152_v43 = vld [vmem:[#allocation3 + $0xb] sm:$0xf]  ;;  %v138_v44 = vadd.f32 %v122_v29, %v90_v36  ;;  %v120_v45 = vmul.f32 0.40261996, %v104_v42  ;;  %v88_v49 = vadd.f32 %v72_v41, %v40_v38  ;;  %v59_v2 = vld [vmem:[#allocation3 + $0x21] sm:$0xff]  ;;  %v61_v29 = vld [vmem:[#allocation3 + $0x31] sm:$0xff] }
  0x1a   :  { %267 = vrot.lane.b32.xlu1 %v233_v31, %s1705_s0  ;;  %v168_v46 = vmul.f32 0.24420135, %v152_v43  ;;  %v200_v47 = vld [vmem:[#allocation3 + $0xc] sm:$0xf]  ;;  %v28_v51 = vld [vmem:[#allocation3 + $0x28] sm:$0xf]  ;;  %263 = vrot.lane.b32.xlu0 %v231_v48, %s1705_s0 }
  0x1b   :  { %v216_v50 = vmul.f32 0.054488685, %v200_v47  ;;  %v60_v52 = vld [vmem:[#allocation3 + $0x29] sm:$0xf]  ;;  %v186_v53 = vadd.f32 %v170_v33, %v138_v44  ;;  %v44_v54 = vmul.f32 0.054488685, %v28_v51  ;;  %v136_v57 = vadd.f32 %v120_v45, %v88_v49 }
  0x1c   :  { %v76_v55 = vmul.f32 0.24420135, %v60_v52  ;;  %v108_v56 = vld [vmem:[#allocation3 + $0x2a] sm:$0xf]  ;;  %v43_v4 = vmul.f32 0.054488685, %v27_v1 }
  0x1d   :  { %v124_v58 = vmul.f32 0.40261996, %v108_v56  ;;  %v156_v59 = vld [vmem:[#allocation3 + $0x2b] sm:$0xf]  ;;  %v234_v61 = vadd.f32 %v218_v37, %v186_v53  ;;  %v184_v3 = vadd.f32 %v168_v46, %v136_v57  ;;  %v75_v5 = vmul.f32 0.24420135, %v59_v2 }
  0x1e   :  { %v204_v60 = vld [vmem:[#allocation3 + $0x2c] sm:$0xf]  ;;  %v92_v62 = vadd.f32 %v76_v55, %v44_v54  ;;  %v172_v63 = vmul.f32 0.24420135, %v156_v59  ;;  %v107_v6 = vld [vmem:[#allocation3 + $0x22] sm:$0xff]  ;;  %v109_v30 = vld [vmem:[#allocation3 + $0x32] sm:$0xff] }
  0x1f   :  { %v220_v0 = vmul.f32 0.054488685, %v204_v60  ;;  %v155_v7 = vld [vmem:[#allocation3 + $0x23] sm:$0xff]  ;;  %269 = vrot.lane.b32.xlu1 %v234_v61, %s1705_s0  ;;  %v123_v9 = vmul.f32 0.40261996, %v107_v6  ;;  %v232_v13 = vadd.f32 %v216_v50, %v184_v3  ;;  %v91_v14 = vadd.f32 %v75_v5, %v43_v4  ;;  %v157_v37 = vld [vmem:[#allocation3 + $0x33] sm:$0xff] }
  0x20   :  { %v140_v8 = vadd.f32 %v124_v58, %v92_v62  ;;  %v171_v10 = vmul.f32 0.24420135, %v155_v7  ;;  %v203_v11 = vld [vmem:[#allocation3 + $0x24] sm:$0xff]  ;;  %v30_v16 = vld [vmem:[#allocation3 + $0x38] sm:$0xf]  ;;  %v33_v4 = vld [vmem:[#allocation3 + $0x50] sm:$0xff] }
  0x21   :  { %v219_v15 = vmul.f32 0.054488685, %v203_v11  ;;  %v62_v17 = vld [vmem:[#allocation3 + $0x39] sm:$0xf]  ;;  %v46_v19 = vmul.f32 0.054488685, %v30_v16  ;;  %265 = vrot.lane.b32.xlu0 %v232_v13, %s1705_s0  ;;  %v139_v22 = vadd.f32 %v123_v9, %v91_v14 }
  0x22   :  { %v188_v18 = vadd.f32 %v172_v63, %v140_v8  ;;  %v78_v20 = vmul.f32 0.24420135, %v62_v17  ;;  %v110_v21 = vld [vmem:[#allocation3 + $0x3a] sm:$0xf]  ;;  %v45_v32 = vmul.f32 0.054488685, %v29_v12 }
  0x23   :  { %v126_v23 = vmul.f32 0.40261996, %v110_v21  ;;  %v158_v24 = vld [vmem:[#allocation3 + $0x3b] sm:$0xf]  ;;  %v187_v31 = vadd.f32 %v171_v10, %v139_v22  ;;  %v77_v33 = vmul.f32 0.24420135, %v61_v29 }
  0x24   :  { %v206_v25 = vld [vmem:[#allocation3 + $0x3c] sm:$0xf]  ;;  %v236_v26 = vadd.f32 %v220_v0, %v188_v18  ;;  %v94_v27 = vadd.f32 %v78_v20, %v46_v19  ;;  %v174_v28 = vmul.f32 0.24420135, %v158_v24  ;;  %v125_v34 = vmul.f32 0.40261996, %v109_v30 }
  0x25   :  { %v222_v36 = vmul.f32 0.054488685, %v206_v25  ;;  %v205_v38 = vld [vmem:[#allocation3 + $0x34] sm:$0xff]  ;;  %v32_v39 = vld [vmem:[#allocation3 + $0x48] sm:$0xf]  ;;  %v235_v40 = vadd.f32 %v219_v15, %v187_v31  ;;  %v93_v41 = vadd.f32 %v77_v33, %v45_v32  ;;  %v31_v57 = vld [vmem:[#allocation3 + $0x40] sm:$0xff] }
  0x26   :  { %273 = vrot.lane.b32.xlu1 %v236_v26, %s1705_s0  ;;  %v142_v35 = vadd.f32 %v126_v23, %v94_v27  ;;  %v173_v42 = vmul.f32 0.24420135, %v157_v37  ;;  %v221_v43 = vmul.f32 0.054488685, %v205_v38  ;;  %v64_v44 = vld [vmem:[#allocation3 + $0x49] sm:$0xf] }
  0x27   :  { %v48_v46 = vmul.f32 0.054488685, %v32_v39  ;;  %v80_v47 = vmul.f32 0.24420135, %v64_v44  ;;  %v112_v48 = vld [vmem:[#allocation3 + $0x4a] sm:$0xf]  ;;  %271 = vrot.lane.b32.xlu0 %v235_v40, %s1705_s0  ;;  %v141_v49 = vadd.f32 %v125_v34, %v93_v41 }
  0x28   :  { %v190_v45 = vadd.f32 %v174_v28, %v142_v35  ;;  %v128_v50 = vmul.f32 0.40261996, %v112_v48  ;;  %v160_v51 = vld [vmem:[#allocation3 + $0x4b] sm:$0xf]  ;;  %v63_v58 = vld [vmem:[#allocation3 + $0x41] sm:$0xff]  ;;  %v65_v21 = vld [vmem:[#allocation3 + $0x51] sm:$0xff] }
  0x29   :  { %v208_v52 = vld [vmem:[#allocation3 + $0x4c] sm:$0xf]  ;;  %v96_v54 = vadd.f32 %v80_v47, %v48_v46  ;;  %v176_v55 = vmul.f32 0.24420135, %v160_v51  ;;  %v189_v59 = vadd.f32 %v173_v42, %v141_v49  ;;  %v47_v60 = vmul.f32 0.054488685, %v31_v57 }
  0x2a   :  { %v238_v53 = vadd.f32 %v222_v36, %v190_v45  ;;  %v224_v56 = vmul.f32 0.054488685, %v208_v52  ;;  %v79_v61 = vmul.f32 0.24420135, %v63_v58  ;;  %v111_v62 = vld [vmem:[#allocation3 + $0x42] sm:$0xff]  ;;  %v113_v22 = vld [vmem:[#allocation3 + $0x52] sm:$0xff] }
  0x2b   :  { %v159_v63 = vld [vmem:[#allocation3 + $0x43] sm:$0xff]  ;;  %v144_v0 = vadd.f32 %v128_v50, %v96_v54  ;;  %v127_v1 = vmul.f32 0.40261996, %v111_v62  ;;  %v237_v5 = vadd.f32 %v221_v43, %v189_v59  ;;  %v34_v8 = vld [vmem:[#allocation3 + $0x58] sm:$0xf]  ;;  %vm313_vm1 = vcmask 142352  }
  0x2c   :  { %277 = vrot.lane.b32.xlu1 %v238_v53, %s1705_s0  ;;  %v175_v2 = vmul.f32 0.24420135, %v159_v63  ;;  %v207_v3 = vld [vmem:[#allocation3 + $0x44] sm:$0xff]  ;;  %v95_v6 = vadd.f32 %v79_v61, %v47_v60  ;;  %v66_v9 = vld [vmem:[#allocation3 + $0x59] sm:$0xf]  ;;  %v37_v60 = vld [vmem:[#allocation3 + $0x70] sm:$0xff] }
  0x2d   :  { %v223_v7 = vmul.f32 0.054488685, %v207_v3  ;;  %v192_v10 = vadd.f32 %v176_v55, %v144_v0  ;;  %v50_v11 = vmul.f32 0.054488685, %v34_v8  ;;  %v82_v12 = vmul.f32 0.24420135, %v66_v9  ;;  %275 = vrot.lane.b32.xlu0 %v237_v5, %s1705_s0 }
  0x2e   :  { %v114_v13 = vld [vmem:[#allocation3 + $0x5a] sm:$0xf]  ;;  %v143_v14 = vadd.f32 %v127_v1, %v95_v6  ;;  %v49_v24 = vmul.f32 0.054488685, %v33_v4  ;;  %v81_v25 = vmul.f32 0.24420135, %v65_v21 }
  0x2f   :  { %v130_v15 = vmul.f32 0.40261996, %v114_v13  ;;  %v162_v16 = vld [vmem:[#allocation3 + $0x5b] sm:$0xf]  ;;  %v240_v18 = vadd.f32 %v224_v56, %v192_v10  ;;  %v98_v19 = vadd.f32 %v82_v12, %v50_v11  ;;  %v129_v26 = vmul.f32 0.40261996, %v113_v22 }
  0x30   :  { %v210_v17 = vld [vmem:[#allocation3 + $0x5c] sm:$0xf]  ;;  %v178_v20 = vmul.f32 0.24420135, %v162_v16  ;;  %v191_v23 = vadd.f32 %v175_v2, %v143_v14  ;;  %v161_v29 = vld [vmem:[#allocation3 + $0x53] sm:$0xff]  ;;  %v97_v33 = vadd.f32 %v81_v25, %v49_v24  ;;  %v35_v49 = vld [vmem:[#allocation3 + $0x60] sm:$0xff] }
  0x31   :  { %281 = vrot.lane.b32.xlu1 %v240_v18, %s1705_s0  ;;  %v146_v27 = vadd.f32 %v130_v15, %v98_v19  ;;  %v226_v28 = vmul.f32 0.054488685, %v210_v17  ;;  %v209_v30 = vld [vmem:[#allocation3 + $0x54] sm:$0xff]  ;;  %v36_v31 = vld [vmem:[#allocation3 + $0x68] sm:$0xf]  ;;  %vm441_vm2 = vcmask 139280  }
  0x32   :  { %v239_v32 = vadd.f32 %v223_v7, %v191_v23  ;;  %v177_v34 = vmul.f32 0.24420135, %v161_v29  ;;  %v225_v35 = vmul.f32 0.054488685, %v209_v30  ;;  %v68_v36 = vld [vmem:[#allocation3 + $0x69] sm:$0xf]  ;;  %v145_v41 = vadd.f32 %v129_v26, %v97_v33 }
  0x33   :  { %v194_v37 = vadd.f32 %v178_v20, %v146_v27  ;;  %v52_v38 = vmul.f32 0.054488685, %v36_v31  ;;  %v84_v39 = vmul.f32 0.24420135, %v68_v36  ;;  %v116_v40 = vld [vmem:[#allocation3 + $0x6a] sm:$0xf] }
  0x34   :  { %279 = vrot.lane.b32.xlu0 %v239_v32, %s1705_s0  ;;  %v132_v42 = vmul.f32 0.40261996, %v116_v40  ;;  %v164_v43 = vld [vmem:[#allocation3 + $0x6b] sm:$0xf]  ;;  %v67_v50 = vld [vmem:[#allocation3 + $0x61] sm:$0xff]  ;;  %v193_v51 = vadd.f32 %v177_v34, %v145_v41  ;;  %v69_v13 = vld [vmem:[#allocation3 + $0x71] sm:$0xff] }
  0x35   :  { %v212_v44 = vld [vmem:[#allocation3 + $0x6c] sm:$0xf]  ;;  %v242_v45 = vadd.f32 %v226_v28, %v194_v37  ;;  %v100_v46 = vadd.f32 %v84_v39, %v52_v38  ;;  %v180_v47 = vmul.f32 0.24420135, %v164_v43  ;;  %v51_v52 = vmul.f32 0.054488685, %v35_v49 }
  0x36   :  { %v228_v48 = vmul.f32 0.054488685, %v212_v44  ;;  %v83_v53 = vmul.f32 0.24420135, %v67_v50  ;;  %v115_v54 = vld [vmem:[#allocation3 + $0x62] sm:$0xff]  ;;  %v241_v61 = vadd.f32 %v225_v35, %v193_v51  ;;  %v117_v14 = vld [vmem:[#allocation3 + $0x72] sm:$0xff] }
  0x37   :  { %v163_v55 = vld [vmem:[#allocation3 + $0x63] sm:$0xff]  ;;  %285 = vrot.lane.b32.xlu1 %v242_v45, %s1705_s0  ;;  %v148_v56 = vadd.f32 %v132_v42, %v100_v46  ;;  %v131_v57 = vmul.f32 0.40261996, %v115_v54  ;;  %v38_v0 = vld [vmem:[#allocation3 + $0x78] sm:$0xf]  ;;  %s1706_s13 = smov 124  }
  0x38   :  { %v179_v58 = vmul.f32 0.24420135, %v163_v55  ;;  %v211_v59 = vld [vmem:[#allocation3 + $0x64] sm:$0xff]  ;;  %v99_v62 = vadd.f32 %v83_v53, %v51_v52  ;;  %v70_v1 = vld [vmem:[#allocation3 + $0x79] sm:$0xf]  ;;  %283 = vrot.lane.b32.xlu0 %v241_v61, %s1705_s0  ;;  %vm938_vm3 = vcmask 7168  }
  0x39   :  { %v227_v63 = vmul.f32 0.054488685, %v211_v59  ;;  %v196_v2 = vadd.f32 %v180_v47, %v148_v56  ;;  %v54_v3 = vmul.f32 0.054488685, %v38_v0  ;;  %v86_v4 = vmul.f32 0.24420135, %v70_v1 }
  0x3a   :  { %v118_v5 = vld [vmem:[#allocation3 + $0x7a] sm:$0xf]  ;;  %v147_v6 = vadd.f32 %v131_v57, %v99_v62  ;;  %v53_v16 = vmul.f32 0.054488685, %v37_v60  ;;  %v85_v17 = vmul.f32 0.24420135, %v69_v13 }
  0x3b   :  { %v134_v7 = vmul.f32 0.40261996, %v118_v5  ;;  %v166_v8 = vld [vmem:[#allocation3 + $0x7b] sm:$0xf]  ;;  %v244_v10 = vadd.f32 %v228_v48, %v196_v2  ;;  %v102_v11 = vadd.f32 %v86_v4, %v54_v3  ;;  %v133_v18 = vmul.f32 0.40261996, %v117_v14 }
  0x3c   :  { %v214_v9 = vld [vmem:[#allocation3 + $0x7c] sm:$0xf]  ;;  %v182_v12 = vmul.f32 0.24420135, %v166_v8  ;;  %v195_v15 = vadd.f32 %v179_v58, %v147_v6  ;;  %v165_v21 = vld [vmem:[#allocation3 + $0x73] sm:$0xff]  ;;  %v101_v25 = vadd.f32 %v85_v17, %v53_v16  ;;  %vm1035_vm4 = vcmask 154768  }
  0x3d   :  { %289 = vrot.lane.b32.xlu1 %v244_v10, %s1705_s0  ;;  %v150_v19 = vadd.f32 %v134_v7, %v102_v11  ;;  %v230_v20 = vmul.f32 0.054488685, %v214_v9  ;;  %v213_v22 = vld [vmem:[#allocation3 + $0x74] sm:$0xff]  ;;  %v330_v23 = vld [vmem:[#allocation3 + $0x12] sm:$0x1]  ;;  %s1707_s14 = smov 126  }
  0x3e   :  { %v243_v24 = vadd.f32 %v227_v63, %v195_v15  ;;  %v181_v26 = vmul.f32 0.24420135, %v165_v21  ;;  %v229_v27 = vmul.f32 0.054488685, %v213_v22  ;;  %v346_v28 = vld [vmem:[#allocation3 + $0x11] sm:$0x1]  ;;  %v149_v33 = vadd.f32 %v133_v18, %v101_v25 }
  0x3f   :  { %v198_v29 = vadd.f32 %v182_v12, %v150_v19  ;;  %v338_v30 = vmul.f32 0.054488685, %v330_v23  ;;  %v354_v31 = vmul.f32 0.24420135, %v346_v28  ;;  %v370_v32 = vld [vmem:[#allocation3 + $0x10] sm:$0x1] }
  0x40   :  { %287 = vrot.lane.b32.xlu0 %v243_v24, %s1705_s0  ;;  %v378_v34 = vmul.f32 0.40261996, %v370_v32  ;;  %v329_v35 = vld [vmem:[#allocation3 + $0x2] sm:$0x1]  ;;  %v345_v36 = vld [vmem:[#allocation3 + $0x1] sm:$0x1]  ;;  %v197_v42 = vadd.f32 %v181_v26, %v149_v33 }
  0x41   :  { %v246_v37 = vadd.f32 %v230_v20, %v198_v29  ;;  %v362_v38 = vadd.f32 %v354_v31, %v338_v30  ;;  %v337_v39 = vmul.f32 0.054488685, %v329_v35  ;;  %v353_v40 = vmul.f32 0.24420135, %v345_v36  ;;  %v369_v41 = vld [vmem:[#allocation3] sm:$0x1] }
  0x42   :  { %v377_v43 = vmul.f32 0.40261996, %v369_v41  ;;  %v332_v44 = vld [vmem:[#allocation3 + $0x32] sm:$0x1]  ;;  %v348_v45 = vld [vmem:[#allocation3 + $0x31] sm:$0x1]  ;;  %v245_v51 = vadd.f32 %v229_v27, %v197_v42 }
  0x43   :  { %293 = vrot.lane.b32.xlu1 %v246_v37, %s1705_s0  ;;  %v386_v46 = vadd.f32 %v378_v34, %v362_v38  ;;  %v361_v47 = vadd.f32 %v353_v40, %v337_v39  ;;  %v340_v48 = vmul.f32 0.054488685, %v332_v44  ;;  %v356_v49 = vmul.f32 0.24420135, %v348_v45  ;;  %v372_v50 = vld [vmem:[#allocation3 + $0x30] sm:$0x1] }
  0x44   :  { %v380_v52 = vmul.f32 0.40261996, %v372_v50  ;;  %v331_v53 = vld [vmem:[#allocation3 + $0x22] sm:$0x1]  ;;  %v347_v54 = vld [vmem:[#allocation3 + $0x21] sm:$0x1]  ;;  %291 = vrot.lane.b32.xlu0 %v245_v51, %s1705_s0 }
  0x45   :  { %v394_v55 = vadd.f32 %v386_v46, %v354_v31  ;;  %v385_v56 = vadd.f32 %v377_v43, %v361_v47  ;;  %v364_v57 = vadd.f32 %v356_v49, %v340_v48  ;;  %v339_v58 = vmul.f32 0.054488685, %v331_v53  ;;  %v371_v59 = vld [vmem:[#allocation3 + $0x20] sm:$0x1]  ;;  %v334_v60 = vld [vmem:[#allocation3 + $0x52] sm:$0x1] }
  0x46   :  { %v355_v61 = vmul.f32 0.24420135, %v347_v54  ;;  %v379_v62 = vmul.f32 0.40261996, %v371_v59  ;;  %v342_v63 = vmul.f32 0.054488685, %v334_v60 }
  0x47   :  { %v402_v0 = vadd.f32 %v394_v55, %v338_v30  ;;  %v393_v1 = vadd.f32 %v385_v56, %v353_v40  ;;  %v388_v2 = vadd.f32 %v380_v52, %v364_v57  ;;  %v350_v3 = vld [vmem:[#allocation3 + $0x51] sm:$0x1]  ;;  %v374_v4 = vld [vmem:[#allocation3 + $0x50] sm:$0x1]  ;;  %v333_v5 = vld [vmem:[#allocation3 + $0x42] sm:$0x1] }
  0x48   :  { %v363_v6 = vadd.f32 %v355_v61, %v339_v58  ;;  %v358_v7 = vmul.f32 0.24420135, %v350_v3  ;;  %v382_v8 = vmul.f32 0.40261996, %v374_v4  ;;  %v341_v9 = vmul.f32 0.054488685, %v333_v5 }
  0x49   :  { %419 = vrot.lane.b32.xlu1 %v402_v0, %s1705_s0  ;;  %v401_v10 = vadd.f32 %v393_v1, %v337_v39  ;;  %v396_v11 = vadd.f32 %v388_v2, %v356_v49  ;;  %v349_v12 = vld [vmem:[#allocation3 + $0x41] sm:$0x1]  ;;  %v373_v13 = vld [vmem:[#allocation3 + $0x40] sm:$0x1]  ;;  %v336_v14 = vld [vmem:[#allocation3 + $0x72] sm:$0x1] }
  0x4a   :  { %v387_v15 = vadd.f32 %v379_v62, %v363_v6  ;;  %v366_v16 = vadd.f32 %v358_v7, %v342_v63  ;;  %v357_v17 = vmul.f32 0.24420135, %v349_v12  ;;  %v381_v18 = vmul.f32 0.40261996, %v373_v13  ;;  %v352_v19 = vld [vmem:[#allocation3 + $0x71] sm:$0x1] }
  0x4b   :  { %417 = vrot.lane.b32.xlu0 %v401_v10, %s1705_s0  ;;  %v404_v20 = vadd.f32 %v396_v11, %v340_v48  ;;  %v344_v21 = vmul.f32 0.054488685, %v336_v14  ;;  %v360_v22 = vmul.f32 0.24420135, %v352_v19  ;;  %v376_v23 = vld [vmem:[#allocation3 + $0x70] sm:$0x1] }
  0x4c   :  { %v395_v24 = vadd.f32 %v387_v15, %v355_v61  ;;  %v390_v25 = vadd.f32 %v382_v8, %v366_v16  ;;  %v365_v26 = vadd.f32 %v357_v17, %v341_v9  ;;  %v384_v27 = vmul.f32 0.40261996, %v376_v23  ;;  %v335_v28 = vld [vmem:[#allocation3 + $0x62] sm:$0x1]  ;;  %v351_v29 = vld [vmem:[#allocation3 + $0x61] sm:$0x1] }
  0x4d   :  { %423 = vrot.lane.b32.xlu1 %v404_v20, %s1705_s0  ;;  %v368_v30 = vadd.f32 %v360_v22, %v344_v21  ;;  %v343_v31 = vmul.f32 0.054488685, %v335_v28  ;;  %v359_v32 = vmul.f32 0.24420135, %v351_v29  ;;  %v375_v33 = vld [vmem:[#allocation3 + $0x60] sm:$0x1] }
  0x4e   :  { %v403_v34 = vadd.f32 %v395_v24, %v339_v58  ;;  %v398_v35 = vadd.f32 %v390_v25, %v358_v7  ;;  %v389_v36 = vadd.f32 %v381_v18, %v365_v26  ;;  %v383_v37 = vmul.f32 0.40261996, %v375_v33  ;;  %v451_v38 = vld [vmem:[#allocation3 + $0x11] sm:$0x1]  ;;  %v467_v39 = vld [vmem:[#allocation3 + $0x10] sm:$0x1] }
  0x4f   :  { %v392_v40 = vadd.f32 %v384_v27, %v368_v30  ;;  %v367_v41 = vadd.f32 %v359_v32, %v343_v31  ;;  %v459_v42 = vmul.f32 0.054488685, %v451_v38  ;;  %v475_v43 = vmul.f32 0.24420135, %v467_v39  ;;  %v507_v44 = vld [vmem:[#allocation3 + $0x12] sm:$0x1] }
  0x50   :  { %421 = vrot.lane.b32.xlu0 %v403_v34, %s1705_s0  ;;  %v406_v45 = vadd.f32 %v398_v35, %v342_v63  ;;  %v397_v46 = vadd.f32 %v389_v36, %v357_v17  ;;  %v491_v47 = vmul.f32 0.40261996, %v451_v38  ;;  %v515_v48 = vmul.f32 0.24420135, %v507_v44  ;;  %v531_v49 = vld [vmem:[#allocation3 + $0x13] sm:$0x1] }
  0x51   :  { %v400_v50 = vadd.f32 %v392_v40, %v360_v22  ;;  %v391_v51 = vadd.f32 %v383_v37, %v367_v41  ;;  %v483_v52 = vadd.f32 %v475_v43, %v459_v42  ;;  %v539_v53 = vmul.f32 0.054488685, %v531_v49  ;;  %v450_v54 = vld [vmem:[#allocation3 + $0x1] sm:$0x1]  ;;  %v466_v55 = vld [vmem:[#allocation3] sm:$0x1] }
  0x52   :  { %427 = vrot.lane.b32.xlu1 %v406_v45, %s1705_s0  ;;  %v405_v56 = vadd.f32 %v397_v46, %v341_v9  ;;  %v458_v57 = vmul.f32 0.054488685, %v450_v54  ;;  %v474_v58 = vmul.f32 0.24420135, %v466_v55  ;;  %v490_v59 = vmul.f32 0.40261996, %v450_v54 }
  0x53   :  { %v408_v60 = vadd.f32 %v400_v50, %v344_v21  ;;  %v399_v61 = vadd.f32 %v391_v51, %v359_v32  ;;  %v499_v62 = vadd.f32 %v491_v47, %v483_v52  ;;  %v506_v63 = vld [vmem:[#allocation3 + $0x2] sm:$0x1]  ;;  %v530_v0 = vld [vmem:[#allocation3 + $0x3] sm:$0x1]  ;;  %v453_v1 = vld [vmem:[#allocation3 + $0x31] sm:$0x1] }
  0x54   :  { %425 = vrot.lane.b32.xlu0 %v405_v56, %s1705_s0  ;;  %v482_v2 = vadd.f32 %v474_v58, %v458_v57  ;;  %v514_v3 = vmul.f32 0.24420135, %v506_v63  ;;  %v538_v4 = vmul.f32 0.054488685, %v530_v0  ;;  %v461_v5 = vmul.f32 0.054488685, %v453_v1 }
  0x55   :  { %v407_v6 = vadd.f32 %v399_v61, %v343_v31  ;;  %v523_v7 = vadd.f32 %v515_v48, %v499_v62  ;;  %v469_v8 = vld [vmem:[#allocation3 + $0x30] sm:$0x1]  ;;  %v493_v10 = vmul.f32 0.40261996, %v453_v1  ;;  %v509_v9 = vld [vmem:[#allocation3 + $0x32] sm:$0x1] }
  0x56   :  { %431 = vrot.lane.b32.xlu1 %v408_v60, %s1705_s0  ;;  %v498_v11 = vadd.f32 %v490_v59, %v482_v2  ;;  %v477_v12 = vmul.f32 0.24420135, %v469_v8  ;;  %v517_v13 = vmul.f32 0.24420135, %v509_v9  ;;  %v533_v14 = vld [vmem:[#allocation3 + $0x33] sm:$0x1] }
  0x57   :  { %v547_v15 = vadd.f32 %v539_v53, %v523_v7  ;;  %v541_v16 = vmul.f32 0.054488685, %v533_v14  ;;  %v452_v17 = vld [vmem:[#allocation3 + $0x21] sm:$0x1]  ;;  %v468_v18 = vld [vmem:[#allocation3 + $0x20] sm:$0x1] }
  0x58   :  { %429 = vrot.lane.b32.xlu0 %v407_v6, %s1705_s0  ;;  %v522_v19 = vadd.f32 %v514_v3, %v498_v11  ;;  %v485_v20 = vadd.f32 %v477_v12, %v461_v5  ;;  %v460_v21 = vmul.f32 0.054488685, %v452_v17  ;;  %v476_v22 = vmul.f32 0.24420135, %v468_v18  ;;  %v508_v23 = vld [vmem:[#allocation3 + $0x22] sm:$0x1] }
  0x59   :  { %v492_v24 = vmul.f32 0.40261996, %v452_v17  ;;  %v516_v25 = vmul.f32 0.24420135, %v508_v23  ;;  %v532_v26 = vld [vmem:[#allocation3 + $0x23] sm:$0x1] }
  0x5a   :  { %564 = vrot.lane.b32.xlu1 %v547_v15, %s1705_s0  ;;  %v546_v27 = vadd.f32 %v538_v4, %v522_v19  ;;  %v501_v28 = vadd.f32 %v493_v10, %v485_v20  ;;  %v484_v29 = vadd.f32 %v476_v22, %v460_v21  ;;  %v540_v30 = vmul.f32 0.054488685, %v532_v26  ;;  %v455_v31 = vld [vmem:[#allocation3 + $0x51] sm:$0x1]  ;;  %v471_v32 = vld [vmem:[#allocation3 + $0x50] sm:$0x1] }
  0x5b   :  { %v463_v33 = vmul.f32 0.054488685, %v455_v31  ;;  %v479_v34 = vmul.f32 0.24420135, %v471_v32  ;;  %v495_v35 = vmul.f32 0.40261996, %v455_v31 }
  0x5c   :  { %562 = vrot.lane.b32.xlu0 %v546_v27, %s1705_s0  ;;  %v525_v36 = vadd.f32 %v517_v13, %v501_v28  ;;  %v500_v37 = vadd.f32 %v492_v24, %v484_v29  ;;  %v511_v38 = vld [vmem:[#allocation3 + $0x52] sm:$0x1]  ;;  %v535_v39 = vld [vmem:[#allocation3 + $0x53] sm:$0x1]  ;;  %v454_v40 = vld [vmem:[#allocation3 + $0x41] sm:$0x1] }
  0x5d   :  { %v487_v41 = vadd.f32 %v479_v34, %v463_v33  ;;  %v519_v42 = vmul.f32 0.24420135, %v511_v38  ;;  %v543_v43 = vmul.f32 0.054488685, %v535_v39  ;;  %v462_v44 = vmul.f32 0.054488685, %v454_v40 }
  0x5e   :  { %v549_v45 = vadd.f32 %v541_v16, %v525_v36  ;;  %v524_v46 = vadd.f32 %v516_v25, %v500_v37  ;;  %v470_v47 = vld [vmem:[#allocation3 + $0x40] sm:$0x1]  ;;  %v494_v48 = vmul.f32 0.40261996, %v454_v40  ;;  %v510_v49 = vld [vmem:[#allocation3 + $0x42] sm:$0x1] }
  0x5f   :  { %v503_v50 = vadd.f32 %v495_v35, %v487_v41  ;;  %v478_v51 = vmul.f32 0.24420135, %v470_v47  ;;  %v518_v52 = vmul.f32 0.24420135, %v510_v49  ;;  %v534_v53 = vld [vmem:[#allocation3 + $0x43] sm:$0x1] }
  0x60   :  { %568 = vrot.lane.b32.xlu1 %v549_v45, %s1705_s0  ;;  %v548_v54 = vadd.f32 %v540_v30, %v524_v46  ;;  %v542_v55 = vmul.f32 0.054488685, %v534_v53  ;;  %v457_v56 = vld [vmem:[#allocation3 + $0x71] sm:$0x1]  ;;  %v473_v57 = vld [vmem:[#allocation3 + $0x70] sm:$0x1] }
  0x61   :  { %v527_v58 = vadd.f32 %v519_v42, %v503_v50  ;;  %v486_v59 = vadd.f32 %v478_v51, %v462_v44  ;;  %v465_v60 = vmul.f32 0.054488685, %v457_v56  ;;  %v481_v61 = vmul.f32 0.24420135, %v473_v57  ;;  %v513_v62 = vld [vmem:[#allocation3 + $0x72] sm:$0x1] }
  0x62   :  { %566 = vrot.lane.b32.xlu0 %v548_v54, %s1705_s0  ;;  %v497_v63 = vmul.f32 0.40261996, %v457_v56  ;;  %v521_v0 = vmul.f32 0.24420135, %v513_v62  ;;  %v537_v1 = vld [vmem:[#allocation3 + $0x73] sm:$0x1] }
  0x63   :  { %v551_v2 = vadd.f32 %v543_v43, %v527_v58  ;;  %v502_v3 = vadd.f32 %v494_v48, %v486_v59  ;;  %v489_v4 = vadd.f32 %v481_v61, %v465_v60  ;;  %v545_v5 = vmul.f32 0.054488685, %v537_v1  ;;  %v456_v6 = vld [vmem:[#allocation3 + $0x61] sm:$0x1]  ;;  %v472_v7 = vld [vmem:[#allocation3 + $0x60] sm:$0x1] }
  0x64   :  { %v464_v8 = vmul.f32 0.054488685, %v456_v6  ;;  %v480_v10 = vmul.f32 0.24420135, %v472_v7  ;;  %v496_v9 = vmul.f32 0.40261996, %v456_v6 }
  0x65   :  { %572 = vrot.lane.b32.xlu1 %v551_v2, %s1705_s0  ;;  %v526_v11 = vadd.f32 %v518_v52, %v502_v3  ;;  %v505_v12 = vadd.f32 %v497_v63, %v489_v4  ;;  %v512_v13 = vld [vmem:[#allocation3 + $0x62] sm:$0x1]  ;;  %v536_v14 = vld [vmem:[#allocation3 + $0x63] sm:$0x1]  ;;  %v595_v15 = vld [vmem:[#allocation3 + $0x1c] sm:$0x1] }
  0x66   :  { %v488_v16 = vadd.f32 %v480_v10, %v464_v8  ;;  %v520_v17 = vmul.f32 0.24420135, %v512_v13  ;;  %v544_v18 = vmul.f32 0.054488685, %v536_v14  ;;  %v603_v19 = vmul.f32 0.054488685, %v595_v15 }
  0x67   :  { %v550_v20 = vadd.f32 %v542_v55, %v526_v11  ;;  %v529_v21 = vadd.f32 %v521_v0, %v505_v12  ;;  %v611_v22 = vld [vmem:[#allocation3 + $0x1d] sm:$0x1]  ;;  %v635_v23 = vld [vmem:[#allocation3 + $0x1e] sm:$0x1]  ;;  %v659_v24 = vld [vmem:[#allocation3 + $0x1f] sm:$0x1] }
  0x68   :  { %v504_v25 = vadd.f32 %v496_v9, %v488_v16  ;;  %v619_v26 = vmul.f32 0.24420135, %v611_v22  ;;  %v643_v27 = vmul.f32 0.40261996, %v635_v23  ;;  %v667_v28 = vmul.f32 0.24420135, %v659_v24 }
  0x69   :  { %570 = vrot.lane.b32.xlu0 %v550_v20, %s1705_s0  ;;  %v553_v29 = vadd.f32 %v545_v5, %v529_v21  ;;  %v683_v30 = vmul.f32 0.054488685, %v635_v23  ;;  %v594_v31 = vld [vmem:[#allocation3 + $0xc] sm:$0x1]  ;;  %v610_v32 = vld [vmem:[#allocation3 + $0xd] sm:$0x1] }
  0x6a   :  { %v528_v33 = vadd.f32 %v520_v17, %v504_v25  ;;  %v627_v34 = vadd.f32 %v619_v26, %v603_v19  ;;  %v602_v35 = vmul.f32 0.054488685, %v594_v31  ;;  %v618_v36 = vmul.f32 0.24420135, %v610_v32  ;;  %v634_v37 = vld [vmem:[#allocation3 + $0xe] sm:$0x1] }
  0x6b   :  { %576 = vrot.lane.b32.xlu1 %v553_v29, %s1705_s0  ;;  %v642_v38 = vmul.f32 0.40261996, %v634_v37  ;;  %v658_v39 = vld [vmem:[#allocation3 + $0xf] sm:$0x1]  ;;  %v682_v40 = vmul.f32 0.054488685, %v634_v37 }
  0x6c   :  { %v552_v41 = vadd.f32 %v544_v18, %v528_v33  ;;  %v651_v42 = vadd.f32 %v643_v27, %v627_v34  ;;  %v626_v43 = vadd.f32 %v618_v36, %v602_v35  ;;  %v666_v44 = vmul.f32 0.24420135, %v658_v39  ;;  %v597_v45 = vld [vmem:[#allocation3 + $0x3c] sm:$0x1]  ;;  %v613_v46 = vld [vmem:[#allocation3 + $0x3d] sm:$0x1] }
  0x6d   :  { %v605_v47 = vmul.f32 0.054488685, %v597_v45  ;;  %v621_v48 = vmul.f32 0.24420135, %v613_v46  ;;  %v637_v49 = vld [vmem:[#allocation3 + $0x3e] sm:$0x1] }
  0x6e   :  { %574 = vrot.lane.b32.xlu0 %v552_v41, %s1705_s0  ;;  %v675_v50 = vadd.f32 %v667_v28, %v651_v42  ;;  %v650_v51 = vadd.f32 %v642_v38, %v626_v43  ;;  %v645_v52 = vmul.f32 0.40261996, %v637_v49  ;;  %v661_v53 = vld [vmem:[#allocation3 + $0x3f] sm:$0x1]  ;;  %v685_v54 = vmul.f32 0.054488685, %v637_v49 }
  0x6f   :  { %v629_v55 = vadd.f32 %v621_v48, %v605_v47  ;;  %v669_v56 = vmul.f32 0.24420135, %v661_v53  ;;  %v596_v57 = vld [vmem:[#allocation3 + $0x2c] sm:$0x1]  ;;  %v612_v58 = vld [vmem:[#allocation3 + $0x2d] sm:$0x1] }
  0x70   :  { %v691_v59 = vadd.f32 %v683_v30, %v675_v50  ;;  %v674_v60 = vadd.f32 %v666_v44, %v650_v51  ;;  %v604_v61 = vmul.f32 0.054488685, %v596_v57  ;;  %v620_v62 = vmul.f32 0.24420135, %v612_v58  ;;  %v636_v63 = vld [vmem:[#allocation3 + $0x2e] sm:$0x1] }
  0x71   :  { %v653_v0 = vadd.f32 %v645_v52, %v629_v55  ;;  %v644_v1 = vmul.f32 0.40261996, %v636_v63  ;;  %v660_v2 = vld [vmem:[#allocation3 + $0x2f] sm:$0x1]  ;;  %v684_v3 = vmul.f32 0.054488685, %v636_v63 }
  0x72   :  { %708 = vrot.lane.b32.xlu1 %v691_v59, %s1705_s0  ;;  %v690_v4 = vadd.f32 %v682_v40, %v674_v60  ;;  %v628_v5 = vadd.f32 %v620_v62, %v604_v61  ;;  %v668_v6 = vmul.f32 0.24420135, %v660_v2  ;;  %v599_v7 = vld [vmem:[#allocation3 + $0x5c] sm:$0x1]  ;;  %v615_v8 = vld [vmem:[#allocation3 + $0x5d] sm:$0x1] }
  0x73   :  { %v677_v10 = vadd.f32 %v669_v56, %v653_v0  ;;  %v607_v9 = vmul.f32 0.054488685, %v599_v7  ;;  %v623_v11 = vmul.f32 0.24420135, %v615_v8  ;;  %v639_v12 = vld [vmem:[#allocation3 + $0x5e] sm:$0x1] }
  0x74   :  { %706 = vrot.lane.b32.xlu0 %v690_v4, %s1705_s0  ;;  %v652_v13 = vadd.f32 %v644_v1, %v628_v5  ;;  %v647_v14 = vmul.f32 0.40261996, %v639_v12  ;;  %v663_v15 = vld [vmem:[#allocation3 + $0x5f] sm:$0x1]  ;;  %v687_v16 = vmul.f32 0.054488685, %v639_v12 }
  0x75   :  { %v693_v17 = vadd.f32 %v685_v54, %v677_v10  ;;  %v631_v18 = vadd.f32 %v623_v11, %v607_v9  ;;  %v671_v19 = vmul.f32 0.24420135, %v663_v15  ;;  %v598_v20 = vld [vmem:[#allocation3 + $0x4c] sm:$0x1]  ;;  %v614_v21 = vld [vmem:[#allocation3 + $0x4d] sm:$0x1] }
  0x76   :  { %v676_v22 = vadd.f32 %v668_v6, %v652_v13  ;;  %v606_v23 = vmul.f32 0.054488685, %v598_v20  ;;  %v622_v24 = vmul.f32 0.24420135, %v614_v21  ;;  %v638_v25 = vld [vmem:[#allocation3 + $0x4e] sm:$0x1] }
  0x77   :  { %712 = vrot.lane.b32.xlu1 %v693_v17, %s1705_s0  ;;  %v655_v26 = vadd.f32 %v647_v14, %v631_v18  ;;  %v646_v27 = vmul.f32 0.40261996, %v638_v25  ;;  %v662_v28 = vld [vmem:[#allocation3 + $0x4f] sm:$0x1]  ;;  %v686_v29 = vmul.f32 0.054488685, %v638_v25 }
  0x78   :  { %v692_v30 = vadd.f32 %v684_v3, %v676_v22  ;;  %v630_v31 = vadd.f32 %v622_v24, %v606_v23  ;;  %v670_v32 = vmul.f32 0.24420135, %v662_v28  ;;  %v601_v33 = vld [vmem:[#allocation3 + $0x7c] sm:$0x1]  ;;  %v617_v34 = vld [vmem:[#allocation3 + $0x7d] sm:$0x1] }
  0x79   :  { %v679_v35 = vadd.f32 %v671_v19, %v655_v26  ;;  %v609_v36 = vmul.f32 0.054488685, %v601_v33  ;;  %v625_v37 = vmul.f32 0.24420135, %v617_v34  ;;  %v641_v38 = vld [vmem:[#allocation3 + $0x7e] sm:$0x1] }
  0x7a   :  { %710 = vrot.lane.b32.xlu0 %v692_v30, %s1705_s0  ;;  %v654_v39 = vadd.f32 %v646_v27, %v630_v31  ;;  %v649_v40 = vmul.f32 0.40261996, %v641_v38  ;;  %v665_v41 = vld [vmem:[#allocation3 + $0x7f] sm:$0x1]  ;;  %v689_v42 = vmul.f32 0.054488685, %v641_v38 }
  0x7b   :  { %v695_v43 = vadd.f32 %v687_v16, %v679_v35  ;;  %v633_v44 = vadd.f32 %v625_v37, %v609_v36  ;;  %v673_v45 = vmul.f32 0.24420135, %v665_v41  ;;  %v600_v46 = vld [vmem:[#allocation3 + $0x6c] sm:$0x1]  ;;  %v616_v47 = vld [vmem:[#allocation3 + $0x6d] sm:$0x1] }
  0x7c   :  { %v678_v48 = vadd.f32 %v670_v32, %v654_v39  ;;  %v608_v49 = vmul.f32 0.054488685, %v600_v46  ;;  %v624_v50 = vmul.f32 0.24420135, %v616_v47  ;;  %v640_v51 = vld [vmem:[#allocation3 + $0x6e] sm:$0x1] }
  0x7d   :  { %716 = vrot.lane.b32.xlu1 %v695_v43, %s1705_s0  ;;  %v657_v52 = vadd.f32 %v649_v40, %v633_v44  ;;  %v648_v53 = vmul.f32 0.40261996, %v640_v51  ;;  %v664_v54 = vld [vmem:[#allocation3 + $0x6f] sm:$0x1]  ;;  %v688_v55 = vmul.f32 0.054488685, %v640_v51 }
  0x7e   :  { %v694_v56 = vadd.f32 %v686_v29, %v678_v48  ;;  %v632_v57 = vadd.f32 %v624_v50, %v608_v49  ;;  %v672_v58 = vmul.f32 0.24420135, %v664_v54  ;;  %v739_v59 = vld [vmem:[#allocation3 + $0x1d] sm:$0x1]  ;;  %v755_v60 = vld [vmem:[#allocation3 + $0x1e] sm:$0x1] }
  0x7f   :  { %v681_v61 = vadd.f32 %v673_v45, %v657_v52  ;;  %v747_v62 = vmul.f32 0.054488685, %v739_v59  ;;  %v763_v63 = vmul.f32 0.24420135, %v755_v60  ;;  %v779_v0 = vld [vmem:[#allocation3 + $0x1f] sm:$0x1] }
  0x80   :  { %714 = vrot.lane.b32.xlu0 %v694_v56, %s1705_s0  ;;  %v656_v1 = vadd.f32 %v648_v53, %v632_v57  ;;  %v787_v2 = vmul.f32 0.40261996, %v779_v0  ;;  %v738_v3 = vld [vmem:[#allocation3 + $0xd] sm:$0x1]  ;;  %v754_v4 = vld [vmem:[#allocation3 + $0xe] sm:$0x1] }
  0x81   :  { %v697_v5 = vadd.f32 %v689_v42, %v681_v61  ;;  %v771_v6 = vadd.f32 %v763_v63, %v747_v62  ;;  %v746_v7 = vmul.f32 0.054488685, %v738_v3  ;;  %v762_v8 = vmul.f32 0.24420135, %v754_v4  ;;  %v778_v10 = vld [vmem:[#allocation3 + $0xf] sm:$0x1] }
  0x82   :  { %v680_v9 = vadd.f32 %v672_v58, %v656_v1  ;;  %v786_v11 = vmul.f32 0.40261996, %v778_v10  ;;  %v741_v12 = vld [vmem:[#allocation3 + $0x3d] sm:$0x1]  ;;  %v757_v13 = vld [vmem:[#allocation3 + $0x3e] sm:$0x1] }
  0x83   :  { %720 = vrot.lane.b32.xlu1 %v697_v5, %s1705_s0  ;;  %v795_v14 = vadd.f32 %v787_v2, %v771_v6  ;;  %v770_v15 = vadd.f32 %v762_v8, %v746_v7  ;;  %v749_v16 = vmul.f32 0.054488685, %v741_v12  ;;  %v765_v17 = vmul.f32 0.24420135, %v757_v13  ;;  %v781_v18 = vld [vmem:[#allocation3 + $0x3f] sm:$0x1] }
  0x84   :  { %v696_v19 = vadd.f32 %v688_v55, %v680_v9  ;;  %v789_v20 = vmul.f32 0.40261996, %v781_v18  ;;  %v740_v21 = vld [vmem:[#allocation3 + $0x2d] sm:$0x1]  ;;  %v756_v22 = vld [vmem:[#allocation3 + $0x2e] sm:$0x1] }
  0x85   :  { %v803_v23 = vadd.f32 %v795_v14, %v763_v63  ;;  %v794_v24 = vadd.f32 %v786_v11, %v770_v15  ;;  %v773_v25 = vadd.f32 %v765_v17, %v749_v16  ;;  %v748_v26 = vmul.f32 0.054488685, %v740_v21  ;;  %v780_v27 = vld [vmem:[#allocation3 + $0x2f] sm:$0x1]  ;;  %v743_v28 = vld [vmem:[#allocation3 + $0x5d] sm:$0x1] }
  0x86   :  { %718 = vrot.lane.b32.xlu0 %v696_v19, %s1705_s0  ;;  %v764_v29 = vmul.f32 0.24420135, %v756_v22  ;;  %v788_v30 = vmul.f32 0.40261996, %v780_v27  ;;  %v751_v31 = vmul.f32 0.054488685, %v743_v28 }
  0x87   :  { %v811_v32 = vadd.f32 %v803_v23, %v747_v62  ;;  %v802_v33 = vadd.f32 %v794_v24, %v762_v8  ;;  %v797_v34 = vadd.f32 %v789_v20, %v773_v25  ;;  %v759_v35 = vld [vmem:[#allocation3 + $0x5e] sm:$0x1]  ;;  %v783_v36 = vld [vmem:[#allocation3 + $0x5f] sm:$0x1]  ;;  %v742_v37 = vld [vmem:[#allocation3 + $0x4d] sm:$0x1] }
  0x88   :  { %v772_v38 = vadd.f32 %v764_v29, %v748_v26  ;;  %v767_v39 = vmul.f32 0.24420135, %v759_v35  ;;  %v791_v40 = vmul.f32 0.40261996, %v783_v36  ;;  %v750_v41 = vmul.f32 0.054488685, %v742_v37 }
  0x89   :  { %828 = vrot.lane.b32.xlu1 %v811_v32, %s1705_s0  ;;  %v810_v42 = vadd.f32 %v802_v33, %v746_v7  ;;  %v805_v43 = vadd.f32 %v797_v34, %v765_v17  ;;  %v758_v44 = vld [vmem:[#allocation3 + $0x4e] sm:$0x1]  ;;  %v782_v45 = vld [vmem:[#allocation3 + $0x4f] sm:$0x1]  ;;  %v745_v46 = vld [vmem:[#allocation3 + $0x7d] sm:$0x1] }
  0x8a   :  { %v796_v47 = vadd.f32 %v788_v30, %v772_v38  ;;  %v775_v48 = vadd.f32 %v767_v39, %v751_v31  ;;  %v766_v49 = vmul.f32 0.24420135, %v758_v44  ;;  %v790_v50 = vmul.f32 0.40261996, %v782_v45  ;;  %v761_v51 = vld [vmem:[#allocation3 + $0x7e] sm:$0x1] }
  0x8b   :  { %826 = vrot.lane.b32.xlu0 %v810_v42, %s1705_s0  ;;  %v813_v53 = vadd.f32 %v805_v43, %v749_v16  ;;  %v753_v54 = vmul.f32 0.054488685, %v745_v46  ;;  %v769_v55 = vmul.f32 0.24420135, %v761_v51  ;;  %v785_v56 = vld [vmem:[#allocation3 + $0x7f] sm:$0x1] }
  0x8c   :  { %v268_v52 = vpop.permute.xlu1 %267  ;;  %v804_v57 = vadd.f32 %v796_v47, %v764_v29  ;;  %v799_v58 = vadd.f32 %v791_v40, %v775_v48  ;;  %v774_v59 = vadd.f32 %v766_v49, %v750_v41  ;;  %v793_v60 = vmul.f32 0.40261996, %v785_v56  ;;  %v744_v61 = vld [vmem:[#allocation3 + $0x6d] sm:$0x1]  ;;  %v760_v62 = vld [vmem:[#allocation3 + $0x6e] sm:$0x1]  ;;  %v264_v7 = vpop.permute.xlu0 %263 }
  0x8d   :  { %315 = vst.msk [vmem:[#allocation2 + $0x12] sm:$0xff] %vm311_vm0, %v268_v52  ;;  %832 = vrot.lane.b32.xlu1 %v813_v53, %s1705_s0  ;;  %v777_v63 = vadd.f32 %v769_v55, %v753_v54  ;;  %v752_v0 = vmul.f32 0.054488685, %v744_v61  ;;  %v768_v1 = vmul.f32 0.24420135, %v760_v62  ;;  %312 = vst.msk [vmem:[#allocation2 + $0x2] sm:$0xff] %vm311_vm0, %v264_v7 }
  0x8e   :  { %v784_v2 = vld [vmem:[#allocation3 + $0x6f] sm:$0x1]  ;;  %v812_v3 = vadd.f32 %v804_v57, %v748_v26  ;;  %v807_v4 = vadd.f32 %v799_v58, %v767_v39  ;;  %v798_v5 = vadd.f32 %v790_v50, %v774_v59  ;;  %vm1132_vm5 = vcmask 15368   ;;  %s1708_s15 = smov 4   ;;  %s1709_s16 = smov 127  }
  0x8f   :  { %v792_v6 = vmul.f32 0.40261996, %v784_v2  ;;  %v801_v8 = vadd.f32 %v793_v60, %v777_v63  ;;  %v776_v10 = vadd.f32 %v768_v1, %v752_v0  ;;  %vm1229_vm6 = vcmask 162968   ;;  %s1710_s17 = smov 125   ;;  %s1711_s18 = smov [#allocation6]  }
  0x90   :  { %830 = vrot.lane.b32.xlu0 %v812_v3, %s1705_s0  ;;  %v815_v9 = vadd.f32 %v807_v4, %v751_v31  ;;  %v806_v11 = vadd.f32 %v798_v5, %v766_v49  ;;  %vm1614_vm7 = vcmask 130048   ;;  %s1636_s19 = sshll.u32 %s1711_s18, 4  ;;  %s1637_s19 = int_to_ptr.vmem [resolvable:$true] %s1636_s19 }
  0x91   :  { %v809_v12 = vadd.f32 %v801_v8, %v769_v55  ;;  %v800_v13 = vadd.f32 %v792_v6, %v776_v10  ;;  %v270_v14 = vpop.permute.xlu1 %269  ;;  %s1678_s20 = scalar_lea.vmem %s1637_s19, 2048  ;;  %p1683_p6 = scmp.lt.s32.totalorder %s1637_s19, %s1637_s19 }
  0x92   :  { %836 = vrot.lane.b32.xlu1 %v815_v9, %s1705_s0  ;;  %v814_v15 = vadd.f32 %v806_v11, %v750_v41  ;;  %316 = vst.msk [vmem:[#allocation2 + $0x1a] sm:$0xf] %vm313_vm1, %v270_v14  ;;  %p1679_p5 = scmp.ne.s32.totalorder %s1637_s19, %s1678_s20  ;;  %p1684_p7 = scmp.lt.s32.totalorder %s1678_s20, %s1678_s20 }
  0x93   :  { %v817_v16 = vadd.f32 %v809_v12, %v753_v54  ;;  %v808_v17 = vadd.f32 %v800_v13, %v768_v1  ;;  %v266_v18 = vpop.permute.xlu0 %265 }
  0x94   :  { %834 = vrot.lane.b32.xlu0 %v814_v15, %s1705_s0  ;;  %314 = vst.msk [vmem:[#allocation2 + $0xa] sm:$0xf] %vm313_vm1, %v266_v18  ;;  %p1685_p8 = por %p1684_p7, %p1683_p6 }
  0x95   :  { %v816_v19 = vadd.f32 %v808_v17, %v752_v0 }
  0x96   :  { %840 = vrot.lane.b32.xlu1 %v817_v16, %s1705_s0  ;;  %p1686_p9 = pnand %p1685_p8, %p1679_p5 }
  0x98   :  { %v274_v20 = vpop.permute.xlu1 %273  ;;  %838 = vrot.lane.b32.xlu0 %v816_v19, %s1705_s0 }
  0x99   :  { %318 = vst.msk [vmem:[#allocation2 + $0x2a] sm:$0xf] %vm313_vm1, %v274_v20  ;;  %v272_v21 = vpop.permute.xlu0 %271 }
  0x9a   :  { %317 = vst.msk [vmem:[#allocation2 + $0x22] sm:$0xff] %vm311_vm0, %v272_v21 }
  0x9e   :  { %v278_v22 = vpop.permute.xlu1 %277 }
  0x9f   :  { %320 = vst.msk [vmem:[#allocation2 + $0x3a] sm:$0xf] %vm313_vm1, %v278_v22  ;;  %v276_v23 = vpop.permute.xlu0 %275 }
  0xa0   :  { %319 = vst.msk [vmem:[#allocation2 + $0x32] sm:$0xff] %vm311_vm0, %v276_v23 }
  0xa3   :  { %v282_v24 = vpop.permute.xlu1 %281 }
  0xa4   :  { %322 = vst.msk [vmem:[#allocation2 + $0x4a] sm:$0xf] %vm313_vm1, %v282_v24 }
  0xa6   :  { %v280_v25 = vpop.permute.xlu0 %279 }
  0xa7   :  { %321 = vst.msk [vmem:[#allocation2 + $0x42] sm:$0xff] %vm311_vm0, %v280_v25 }
  0xa9   :  { %v286_v26 = vpop.permute.xlu1 %285 }
  0xaa   :  { %324 = vst.msk [vmem:[#allocation2 + $0x5a] sm:$0xf] %vm313_vm1, %v286_v26  ;;  %v284_v27 = vpop.permute.xlu0 %283 }
  0xab   :  { %323 = vst.msk [vmem:[#allocation2 + $0x52] sm:$0xff] %vm311_vm0, %v284_v27 }
  0xaf   :  { %v290_v28 = vpop.permute.xlu1 %289 }
  0xb0   :  { %326 = vst.msk [vmem:[#allocation2 + $0x6a] sm:$0xf] %vm313_vm1, %v290_v28 }
  0xb2   :  { %v288_v29 = vpop.permute.xlu0 %287 }
  0xb3   :  { %325 = vst.msk [vmem:[#allocation2 + $0x62] sm:$0xff] %vm311_vm0, %v288_v29 }
  0xb5   :  { %v294_v30 = vpop.permute.xlu1 %293 }
  0xb6   :  { %328 = vst.msk [vmem:[#allocation2 + $0x7a] sm:$0xf] %vm313_vm1, %v294_v30  ;;  %v292_v31 = vpop.permute.xlu0 %291 }
  0xb7   :  { %327 = vst.msk [vmem:[#allocation2 + $0x72] sm:$0xff] %vm311_vm0, %v292_v31 }
  0xbb   :  { %v420_v32 = vpop.permute.xlu1 %419 }
  0xbc   :  { %443 = vst.msk [vmem:[#allocation2 + $0x10] sm:$0x1] %vm441_vm2, %v420_v32 }
  0xbd   :  { %v418_v33 = vpop.permute.xlu0 %417 }
  0xbe   :  { %442 = vst.msk [vmem:[#allocation2] sm:$0x1] %vm441_vm2, %v418_v33 }
  0xbf   :  { %v424_v34 = vpop.permute.xlu1 %423 }
  0xc0   :  { %445 = vst.msk [vmem:[#allocation2 + $0x30] sm:$0x1] %vm441_vm2, %v424_v34 }
  0xc2   :  { %v422_v35 = vpop.permute.xlu0 %421 }
  0xc3   :  { %444 = vst.msk [vmem:[#allocation2 + $0x20] sm:$0x1] %vm441_vm2, %v422_v35 }
  0xc4   :  { %v428_v36 = vpop.permute.xlu1 %427 }
  0xc5   :  { %447 = vst.msk [vmem:[#allocation2 + $0x50] sm:$0x1] %vm441_vm2, %v428_v36 }
  0xc6   :  { %v426_v37 = vpop.permute.xlu0 %425 }
  0xc7   :  { %446 = vst.msk [vmem:[#allocation2 + $0x40] sm:$0x1] %vm441_vm2, %v426_v37 }
  0xc8   :  { %v432_v38 = vpop.permute.xlu1 %431 }
  0xc9   :  { %449 = vst.msk [vmem:[#allocation2 + $0x70] sm:$0x1] %vm441_vm2, %v432_v38 }
  0xca   :  { %v430_v39 = vpop.permute.xlu0 %429 }
  0xcb   :  { %448 = vst.msk [vmem:[#allocation2 + $0x60] sm:$0x1] %vm441_vm2, %v430_v39 }
  0xcc   :  { %v565_v40 = vpop.permute.xlu1 %564 }
  0xcd   :  { %587 = vst.msk [vmem:[#allocation2 + $0x11] sm:$0x1] %vm441_vm2, %v565_v40 }
  0xce   :  { %v563_v41 = vpop.permute.xlu0 %562 }
  0xcf   :  { %586 = vst.msk [vmem:[#allocation2 + $0x1] sm:$0x1] %vm441_vm2, %v563_v41 }
  0xd2   :  { %v569_v42 = vpop.permute.xlu1 %568 }
  0xd3   :  { %589 = vst.msk [vmem:[#allocation2 + $0x31] sm:$0x1] %vm441_vm2, %v569_v42 }
  0xd4   :  { %v567_v43 = vpop.permute.xlu0 %566  ;;  %v860_v46 = vld [vmem:[#allocation2 + $0x10] sm:$0xff] }
  0xd5   :  { %588 = vst.msk [vmem:[#allocation2 + $0x21] sm:$0x1] %vm441_vm2, %v567_v43 }
  0xd6   :  { %v858_v44 = vld [vmem:[#allocation2] sm:$0xff] }
  0xd7   :  { %v573_v45 = vpop.permute.xlu1 %572  ;;  %890 = vrot.lane.b32.xlu0 %v858_v44, %s1706_s13 }
  0xd8   :  { %591 = vst.msk [vmem:[#allocation2 + $0x51] sm:$0x1] %vm441_vm2, %v573_v45 }
  0xda   :  { %v864_v51 = vld [vmem:[#allocation2 + $0x30] sm:$0xff] }
  0xdb   :  { %v571_v47 = vpop.permute.xlu0 %570  ;;  %894 = vrot.lane.b32.xlu0 %v860_v46, %s1706_s13 }
  0xdc   :  { %590 = vst.msk [vmem:[#allocation2 + $0x41] sm:$0x1] %vm441_vm2, %v571_v47  ;;  %v862_v49 = vld [vmem:[#allocation2 + $0x20] sm:$0xff] }
  0xdd   :  { %v577_v48 = vpop.permute.xlu1 %576 }
  0xde   :  { %593 = vst.msk [vmem:[#allocation2 + $0x71] sm:$0x1] %vm441_vm2, %v577_v48 }
  0xdf   :  { %898 = vrot.lane.b32.xlu0 %v862_v49, %s1706_s13  ;;  %v868_v56 = vld [vmem:[#allocation2 + $0x50] sm:$0xff] }
  0xe0   :  { %v575_v50 = vpop.permute.xlu0 %574 }
  0xe1   :  { %592 = vst.msk [vmem:[#allocation2 + $0x61] sm:$0x1] %vm441_vm2, %v575_v50 }
  0xe3   :  { %902 = vrot.lane.b32.xlu0 %v864_v51, %s1706_s13  ;;  %v866_v54 = vld [vmem:[#allocation2 + $0x40] sm:$0xff] }
  0xe4   :  { %v709_v52 = vpop.permute.xlu1 %708 }
  0xe5   :  { %731 = vst.msk [vmem:[#allocation2 + $0x1e] sm:$0x1] %vm441_vm2, %v709_v52  ;;  %v872_v61 = vld [vmem:[#allocation2 + $0x70] sm:$0xff] }
  0xe6   :  { %v707_v53 = vpop.permute.xlu0 %706 }
  0xe7   :  { %730 = vst.msk [vmem:[#allocation2 + $0xe] sm:$0x1] %vm441_vm2, %v707_v53  ;;  %906 = vrot.lane.b32.xlu0 %v866_v54, %s1706_s13 }
  0xe8   :  { %v870_v58 = vld [vmem:[#allocation2 + $0x60] sm:$0xff] }
  0xe9   :  { %v713_v55 = vpop.permute.xlu1 %712 }
  0xea   :  { %733 = vst.msk [vmem:[#allocation2 + $0x3e] sm:$0x1] %vm441_vm2, %v713_v55 }
  0xeb   :  { %910 = vrot.lane.b32.xlu0 %v868_v56, %s1706_s13 }
  0xec   :  { %v711_v57 = vpop.permute.xlu0 %710 }
  0xed   :  { %732 = vst.msk [vmem:[#allocation2 + $0x2e] sm:$0x1] %vm441_vm2, %v711_v57 }
  0xef   :  { %v717_v59 = vpop.permute.xlu1 %716  ;;  %914 = vrot.lane.b32.xlu0 %v870_v58, %s1706_s13 }
  0xf0   :  { %735 = vst.msk [vmem:[#allocation2 + $0x5e] sm:$0x1] %vm441_vm2, %v717_v59 }
  0xf2   :  { %v715_v60 = vpop.permute.xlu0 %714 }
  0xf3   :  { %734 = vst.msk [vmem:[#allocation2 + $0x4e] sm:$0x1] %vm441_vm2, %v715_v60  ;;  %918 = vrot.lane.b32.xlu0 %v872_v61, %s1706_s13 }
  0xf5   :  { %v721_v62 = vpop.permute.xlu1 %720 }
  0xf6   :  { %737 = vst.msk [vmem:[#allocation2 + $0x7e] sm:$0x1] %vm441_vm2, %v721_v62 }
  0xf8   :  { %v719_v63 = vpop.permute.xlu0 %718 }
  0xf9   :  { %736 = vst.msk [vmem:[#allocation2 + $0x6e] sm:$0x1] %vm441_vm2, %v719_v63 }
  0xfb   :  { %v829_v0 = vpop.permute.xlu1 %828 }
  0xfc   :  { %851 = vst.msk [vmem:[#allocation2 + $0x1f] sm:$0x1] %vm441_vm2, %v829_v0 }
  0xfd   :  { %v827_v1 = vpop.permute.xlu0 %826 }
  0xfe   :  { %850 = vst.msk [vmem:[#allocation2 + $0xf] sm:$0x1] %vm441_vm2, %v827_v1 }
  0xff   :  { %v833_v2 = vpop.permute.xlu1 %832 }
 0x100   :  { %853 = vst.msk [vmem:[#allocation2 + $0x3f] sm:$0x1] %vm441_vm2, %v833_v2 }
 0x102   :  { %v831_v3 = vpop.permute.xlu0 %830 }
 0x103   :  { %852 = vst.msk [vmem:[#allocation2 + $0x2f] sm:$0x1] %vm441_vm2, %v831_v3  ;;  %v861_v8 = vld [vmem:[#allocation2 + $0x18] sm:$0xff] }
 0x104   :  { %v837_v4 = vpop.permute.xlu1 %836 }
 0x105   :  { %855 = vst.msk [vmem:[#allocation2 + $0x5f] sm:$0x1] %vm441_vm2, %v837_v4  ;;  %v859_v5 = vld [vmem:[#allocation2 + $0x8] sm:$0xff] }
 0x106   :  { %v835_v6 = vpop.permute.xlu0 %834  ;;  %892 = vrot.lane.b32.xlu1 %v859_v5, %s1706_s13 }
 0x107   :  { %854 = vst.msk [vmem:[#allocation2 + $0x4f] sm:$0x1] %vm441_vm2, %v835_v6  ;;  %v865_v11 = vld [vmem:[#allocation2 + $0x38] sm:$0xff] }
 0x108   :  { %v841_v7 = vpop.permute.xlu1 %840 }
 0x109   :  { %857 = vst.msk [vmem:[#allocation2 + $0x7f] sm:$0x1] %vm441_vm2, %v841_v7 }
 0x10a   :  { %v839_v10 = vpop.permute.xlu0 %838  ;;  %896 = vrot.lane.b32.xlu1 %v861_v8, %s1706_s13  ;;  %v863_v9 = vld [vmem:[#allocation2 + $0x28] sm:$0xff] }
 0x10b   :  { %856 = vst.msk [vmem:[#allocation2 + $0x6f] sm:$0x1] %vm441_vm2, %v839_v10 }
 0x10c   :  { %v869_v13 = vld [vmem:[#allocation2 + $0x58] sm:$0xff] }
 0x10e   :  { %900 = vrot.lane.b32.xlu1 %v863_v9, %s1706_s13  ;;  %v867_v12 = vld [vmem:[#allocation2 + $0x48] sm:$0xff] }
 0x110   :  { %v873_v15 = vld [vmem:[#allocation2 + $0x78] sm:$0xff] }
 0x112   :  { %904 = vrot.lane.b32.xlu1 %v865_v11, %s1706_s13  ;;  %v871_v14 = vld [vmem:[#allocation2 + $0x68] sm:$0xff] }
 0x116   :  { %908 = vrot.lane.b32.xlu1 %v867_v12, %s1706_s13 }
 0x11a   :  { %912 = vrot.lane.b32.xlu1 %v869_v13, %s1706_s13 }
 0x11e   :  { %916 = vrot.lane.b32.xlu1 %v871_v14, %s1706_s13 }
 0x122   :  { %920 = vrot.lane.b32.xlu1 %v873_v15, %s1706_s13 }
 0x149   :  { %v891_v16 = vpop.permute.xlu0 %890 }
 0x14a   :  { %939 = vst.msk [vmem:[#allocation2] sm:$0xff] %vm938_vm3, %v891_v16 }
 0x14d   :  { %v895_v17 = vpop.permute.xlu0 %894 }
 0x14e   :  { %941 = vst.msk [vmem:[#allocation2 + $0x10] sm:$0xff] %vm938_vm3, %v895_v17 }
 0x151   :  { %v899_v18 = vpop.permute.xlu0 %898  ;;  %v955_v19 = vld [vmem:[#allocation2] sm:$0xff] }
 0x152   :  { %943 = vst.msk [vmem:[#allocation2 + $0x20] sm:$0xff] %vm938_vm3, %v899_v18  ;;  %987 = vrot.lane.b32.xlu0 %v955_v19, %s1705_s0 }
 0x155   :  { %v903_v20 = vpop.permute.xlu0 %902  ;;  %v957_v21 = vld [vmem:[#allocation2 + $0x10] sm:$0xff] }
 0x156   :  { %945 = vst.msk [vmem:[#allocation2 + $0x30] sm:$0xff] %vm938_vm3, %v903_v20  ;;  %991 = vrot.lane.b32.xlu0 %v957_v21, %s1705_s0 }
 0x159   :  { %v907_v22 = vpop.permute.xlu0 %906  ;;  %v959_v23 = vld [vmem:[#allocation2 + $0x20] sm:$0xff] }
 0x15a   :  { %947 = vst.msk [vmem:[#allocation2 + $0x40] sm:$0xff] %vm938_vm3, %v907_v22  ;;  %995 = vrot.lane.b32.xlu0 %v959_v23, %s1705_s0 }
 0x15d   :  { %v911_v24 = vpop.permute.xlu0 %910  ;;  %v961_v25 = vld [vmem:[#allocation2 + $0x30] sm:$0xff] }
 0x15e   :  { %949 = vst.msk [vmem:[#allocation2 + $0x50] sm:$0xff] %vm938_vm3, %v911_v24  ;;  %999 = vrot.lane.b32.xlu0 %v961_v25, %s1705_s0 }
 0x161   :  { %v915_v26 = vpop.permute.xlu0 %914  ;;  %v963_v27 = vld [vmem:[#allocation2 + $0x40] sm:$0xff] }
 0x162   :  { %951 = vst.msk [vmem:[#allocation2 + $0x60] sm:$0xff] %vm938_vm3, %v915_v26  ;;  %1003 = vrot.lane.b32.xlu0 %v963_v27, %s1705_s0 }
 0x165   :  { %v919_v28 = vpop.permute.xlu0 %918  ;;  %v965_v29 = vld [vmem:[#allocation2 + $0x50] sm:$0xff] }
 0x166   :  { %953 = vst.msk [vmem:[#allocation2 + $0x70] sm:$0xff] %vm938_vm3, %v919_v28  ;;  %1007 = vrot.lane.b32.xlu0 %v965_v29, %s1705_s0 }
 0x169   :  { %v967_v30 = vld [vmem:[#allocation2 + $0x60] sm:$0xff] }
 0x16a   :  { %1011 = vrot.lane.b32.xlu0 %v967_v30, %s1705_s0 }
 0x16d   :  { %v969_v31 = vld [vmem:[#allocation2 + $0x70] sm:$0xff] }
 0x16e   :  { %1015 = vrot.lane.b32.xlu0 %v969_v31, %s1705_s0 }
 0x178   :  { %v893_v32 = vpop.permute.xlu1 %892 }
 0x179   :  { %940 = vst.msk [vmem:[#allocation2 + $0x8] sm:$0xff] %vm938_vm3, %v893_v32 }
 0x17c   :  { %v897_v33 = vpop.permute.xlu1 %896 }
 0x17d   :  { %942 = vst.msk [vmem:[#allocation2 + $0x18] sm:$0xff] %vm938_vm3, %v897_v33 }
 0x180   :  { %v901_v34 = vpop.permute.xlu1 %900  ;;  %v956_v35 = vld [vmem:[#allocation2 + $0x8] sm:$0xff] }
 0x181   :  { %944 = vst.msk [vmem:[#allocation2 + $0x28] sm:$0xff] %vm938_vm3, %v901_v34  ;;  %989 = vrot.lane.b32.xlu1 %v956_v35, %s1705_s0 }
 0x184   :  { %v905_v36 = vpop.permute.xlu1 %904  ;;  %v958_v37 = vld [vmem:[#allocation2 + $0x18] sm:$0xff] }
 0x185   :  { %946 = vst.msk [vmem:[#allocation2 + $0x38] sm:$0xff] %vm938_vm3, %v905_v36  ;;  %993 = vrot.lane.b32.xlu1 %v958_v37, %s1705_s0 }
 0x188   :  { %v909_v38 = vpop.permute.xlu1 %908  ;;  %v960_v39 = vld [vmem:[#allocation2 + $0x28] sm:$0xff] }
 0x189   :  { %948 = vst.msk [vmem:[#allocation2 + $0x48] sm:$0xff] %vm938_vm3, %v909_v38  ;;  %997 = vrot.lane.b32.xlu1 %v960_v39, %s1705_s0 }
 0x18c   :  { %v913_v40 = vpop.permute.xlu1 %912  ;;  %v962_v41 = vld [vmem:[#allocation2 + $0x38] sm:$0xff] }
 0x18d   :  { %950 = vst.msk [vmem:[#allocation2 + $0x58] sm:$0xff] %vm938_vm3, %v913_v40  ;;  %1001 = vrot.lane.b32.xlu1 %v962_v41, %s1705_s0 }
 0x190   :  { %v917_v42 = vpop.permute.xlu1 %916  ;;  %v964_v43 = vld [vmem:[#allocation2 + $0x48] sm:$0xff] }
 0x191   :  { %952 = vst.msk [vmem:[#allocation2 + $0x68] sm:$0xff] %vm938_vm3, %v917_v42  ;;  %1005 = vrot.lane.b32.xlu1 %v964_v43, %s1705_s0 }
 0x194   :  { %v921_v44 = vpop.permute.xlu1 %920  ;;  %v966_v45 = vld [vmem:[#allocation2 + $0x58] sm:$0xff] }
 0x195   :  { %954 = vst.msk [vmem:[#allocation2 + $0x78] sm:$0xff] %vm938_vm3, %v921_v44  ;;  %1009 = vrot.lane.b32.xlu1 %v966_v45, %s1705_s0 }
 0x198   :  { %v968_v46 = vld [vmem:[#allocation2 + $0x68] sm:$0xff] }
 0x199   :  { %1013 = vrot.lane.b32.xlu1 %v968_v46, %s1705_s0 }
 0x19c   :  { %v970_v47 = vld [vmem:[#allocation2 + $0x78] sm:$0xff] }
 0x19d   :  { %1017 = vrot.lane.b32.xlu1 %v970_v47, %s1705_s0 }
 0x1c4   :  { %v988_v48 = vpop.permute.xlu0 %987 }
 0x1c5   :  { %1036 = vst.msk [vmem:[#allocation2] sm:$0xff] %vm1035_vm4, %v988_v48 }
 0x1c8   :  { %v992_v49 = vpop.permute.xlu0 %991 }
 0x1c9   :  { %1038 = vst.msk [vmem:[#allocation2 + $0x10] sm:$0xff] %vm1035_vm4, %v992_v49 }
 0x1cc   :  { %v996_v50 = vpop.permute.xlu0 %995  ;;  %v1052_v51 = vld [vmem:[#allocation2] sm:$0xff] }
 0x1cd   :  { %1040 = vst.msk [vmem:[#allocation2 + $0x20] sm:$0xff] %vm1035_vm4, %v996_v50  ;;  %1084 = vrot.lane.b32.xlu0 %v1052_v51, %s1707_s14 }
 0x1d0   :  { %v1000_v52 = vpop.permute.xlu0 %999  ;;  %v1054_v53 = vld [vmem:[#allocation2 + $0x10] sm:$0xff] }
 0x1d1   :  { %1042 = vst.msk [vmem:[#allocation2 + $0x30] sm:$0xff] %vm1035_vm4, %v1000_v52  ;;  %1088 = vrot.lane.b32.xlu0 %v1054_v53, %s1707_s14 }
 0x1d4   :  { %v1004_v54 = vpop.permute.xlu0 %1003  ;;  %v1056_v55 = vld [vmem:[#allocation2 + $0x20] sm:$0xff] }
 0x1d5   :  { %1044 = vst.msk [vmem:[#allocation2 + $0x40] sm:$0xff] %vm1035_vm4, %v1004_v54  ;;  %1092 = vrot.lane.b32.xlu0 %v1056_v55, %s1707_s14 }
 0x1d8   :  { %v1008_v56 = vpop.permute.xlu0 %1007  ;;  %v1058_v57 = vld [vmem:[#allocation2 + $0x30] sm:$0xff] }
 0x1d9   :  { %1046 = vst.msk [vmem:[#allocation2 + $0x50] sm:$0xff] %vm1035_vm4, %v1008_v56  ;;  %1096 = vrot.lane.b32.xlu0 %v1058_v57, %s1707_s14 }
 0x1dc   :  { %v1012_v58 = vpop.permute.xlu0 %1011  ;;  %v1060_v59 = vld [vmem:[#allocation2 + $0x40] sm:$0xff] }
 0x1dd   :  { %1048 = vst.msk [vmem:[#allocation2 + $0x60] sm:$0xff] %vm1035_vm4, %v1012_v58  ;;  %1100 = vrot.lane.b32.xlu0 %v1060_v59, %s1707_s14 }
 0x1e0   :  { %v1016_v60 = vpop.permute.xlu0 %1015  ;;  %v1062_v61 = vld [vmem:[#allocation2 + $0x50] sm:$0xff] }
 0x1e1   :  { %1050 = vst.msk [vmem:[#allocation2 + $0x70] sm:$0xff] %vm1035_vm4, %v1016_v60  ;;  %1104 = vrot.lane.b32.xlu0 %v1062_v61, %s1707_s14 }
 0x1e4   :  { %v1064_v62 = vld [vmem:[#allocation2 + $0x60] sm:$0xff] }
 0x1e5   :  { %1108 = vrot.lane.b32.xlu0 %v1064_v62, %s1707_s14 }
 0x1e8   :  { %v1066_v63 = vld [vmem:[#allocation2 + $0x70] sm:$0xff] }
 0x1e9   :  { %1112 = vrot.lane.b32.xlu0 %v1066_v63, %s1707_s14 }
 0x1f3   :  { %v990_v0 = vpop.permute.xlu1 %989 }
 0x1f4   :  { %1037 = vst.msk [vmem:[#allocation2 + $0x8] sm:$0xff] %vm1035_vm4, %v990_v0 }
 0x1f7   :  { %v994_v1 = vpop.permute.xlu1 %993 }
 0x1f8   :  { %1039 = vst.msk [vmem:[#allocation2 + $0x18] sm:$0xff] %vm1035_vm4, %v994_v1 }
 0x1fb   :  { %v998_v2 = vpop.permute.xlu1 %997  ;;  %v1053_v3 = vld [vmem:[#allocation2 + $0x8] sm:$0xff] }
 0x1fc   :  { %1041 = vst.msk [vmem:[#allocation2 + $0x28] sm:$0xff] %vm1035_vm4, %v998_v2  ;;  %1086 = vrot.lane.b32.xlu1 %v1053_v3, %s1707_s14 }
 0x1ff   :  { %v1002_v4 = vpop.permute.xlu1 %1001  ;;  %v1055_v5 = vld [vmem:[#allocation2 + $0x18] sm:$0xff] }
 0x200   :  { %1043 = vst.msk [vmem:[#allocation2 + $0x38] sm:$0xff] %vm1035_vm4, %v1002_v4  ;;  %1090 = vrot.lane.b32.xlu1 %v1055_v5, %s1707_s14 }
 0x203   :  { %v1006_v6 = vpop.permute.xlu1 %1005  ;;  %v1057_v7 = vld [vmem:[#allocation2 + $0x28] sm:$0xff] }
 0x204   :  { %1045 = vst.msk [vmem:[#allocation2 + $0x48] sm:$0xff] %vm1035_vm4, %v1006_v6  ;;  %1094 = vrot.lane.b32.xlu1 %v1057_v7, %s1707_s14 }
 0x207   :  { %v1010_v8 = vpop.permute.xlu1 %1009  ;;  %v1059_v10 = vld [vmem:[#allocation2 + $0x38] sm:$0xff] }
 0x208   :  { %1047 = vst.msk [vmem:[#allocation2 + $0x58] sm:$0xff] %vm1035_vm4, %v1010_v8  ;;  %1098 = vrot.lane.b32.xlu1 %v1059_v10, %s1707_s14 }
 0x20b   :  { %v1014_v9 = vpop.permute.xlu1 %1013  ;;  %v1061_v11 = vld [vmem:[#allocation2 + $0x48] sm:$0xff] }
 0x20c   :  { %1049 = vst.msk [vmem:[#allocation2 + $0x68] sm:$0xff] %vm1035_vm4, %v1014_v9  ;;  %1102 = vrot.lane.b32.xlu1 %v1061_v11, %s1707_s14 }
 0x20f   :  { %v1018_v12 = vpop.permute.xlu1 %1017  ;;  %v1063_v13 = vld [vmem:[#allocation2 + $0x58] sm:$0xff] }
 0x210   :  { %1051 = vst.msk [vmem:[#allocation2 + $0x78] sm:$0xff] %vm1035_vm4, %v1018_v12  ;;  %1106 = vrot.lane.b32.xlu1 %v1063_v13, %s1707_s14 }
 0x213   :  { %v1065_v14 = vld [vmem:[#allocation2 + $0x68] sm:$0xff] }
 0x214   :  { %1110 = vrot.lane.b32.xlu1 %v1065_v14, %s1707_s14 }
 0x217   :  { %v1067_v15 = vld [vmem:[#allocation2 + $0x78] sm:$0xff] }
 0x218   :  { %1114 = vrot.lane.b32.xlu1 %v1067_v15, %s1707_s14 }
 0x23f   :  { %v1085_v16 = vpop.permute.xlu0 %1084 }
 0x240   :  { %1133 = vst.msk [vmem:[#allocation2] sm:$0xff] %vm1132_vm5, %v1085_v16 }
 0x243   :  { %v1089_v17 = vpop.permute.xlu0 %1088 }
 0x244   :  { %1135 = vst.msk [vmem:[#allocation2 + $0x10] sm:$0xff] %vm1132_vm5, %v1089_v17 }
 0x247   :  { %v1093_v18 = vpop.permute.xlu0 %1092  ;;  %v1149_v19 = vld [vmem:[#allocation2] sm:$0xff] }
 0x248   :  { %1137 = vst.msk [vmem:[#allocation2 + $0x20] sm:$0xff] %vm1132_vm5, %v1093_v18  ;;  %1181 = vrot.lane.b32.xlu0 %v1149_v19, %s1708_s15 }
 0x24b   :  { %v1097_v20 = vpop.permute.xlu0 %1096  ;;  %v1151_v21 = vld [vmem:[#allocation2 + $0x10] sm:$0xff] }
 0x24c   :  { %1139 = vst.msk [vmem:[#allocation2 + $0x30] sm:$0xff] %vm1132_vm5, %v1097_v20  ;;  %1185 = vrot.lane.b32.xlu0 %v1151_v21, %s1708_s15 }
 0x24f   :  { %v1101_v22 = vpop.permute.xlu0 %1100  ;;  %v1153_v23 = vld [vmem:[#allocation2 + $0x20] sm:$0xff] }
 0x250   :  { %1141 = vst.msk [vmem:[#allocation2 + $0x40] sm:$0xff] %vm1132_vm5, %v1101_v22  ;;  %1189 = vrot.lane.b32.xlu0 %v1153_v23, %s1708_s15 }
 0x253   :  { %v1105_v24 = vpop.permute.xlu0 %1104  ;;  %v1155_v25 = vld [vmem:[#allocation2 + $0x30] sm:$0xff] }
 0x254   :  { %1143 = vst.msk [vmem:[#allocation2 + $0x50] sm:$0xff] %vm1132_vm5, %v1105_v24  ;;  %1193 = vrot.lane.b32.xlu0 %v1155_v25, %s1708_s15 }
 0x257   :  { %v1109_v26 = vpop.permute.xlu0 %1108  ;;  %v1157_v27 = vld [vmem:[#allocation2 + $0x40] sm:$0xff] }
 0x258   :  { %1145 = vst.msk [vmem:[#allocation2 + $0x60] sm:$0xff] %vm1132_vm5, %v1109_v26  ;;  %1197 = vrot.lane.b32.xlu0 %v1157_v27, %s1708_s15 }
 0x25b   :  { %v1113_v28 = vpop.permute.xlu0 %1112  ;;  %v1159_v29 = vld [vmem:[#allocation2 + $0x50] sm:$0xff] }
 0x25c   :  { %1147 = vst.msk [vmem:[#allocation2 + $0x70] sm:$0xff] %vm1132_vm5, %v1113_v28  ;;  %1201 = vrot.lane.b32.xlu0 %v1159_v29, %s1708_s15 }
 0x25f   :  { %v1161_v30 = vld [vmem:[#allocation2 + $0x60] sm:$0xff] }
 0x260   :  { %1205 = vrot.lane.b32.xlu0 %v1161_v30, %s1708_s15 }
 0x263   :  { %v1163_v31 = vld [vmem:[#allocation2 + $0x70] sm:$0xff] }
 0x264   :  { %1209 = vrot.lane.b32.xlu0 %v1163_v31, %s1708_s15 }
 0x26e   :  { %v1087_v32 = vpop.permute.xlu1 %1086 }
 0x26f   :  { %1134 = vst.msk [vmem:[#allocation2 + $0x8] sm:$0xff] %vm1132_vm5, %v1087_v32 }
 0x272   :  { %v1091_v33 = vpop.permute.xlu1 %1090 }
 0x273   :  { %1136 = vst.msk [vmem:[#allocation2 + $0x18] sm:$0xff] %vm1132_vm5, %v1091_v33 }
 0x276   :  { %v1095_v34 = vpop.permute.xlu1 %1094  ;;  %v1150_v35 = vld [vmem:[#allocation2 + $0x8] sm:$0xff] }
 0x277   :  { %1138 = vst.msk [vmem:[#allocation2 + $0x28] sm:$0xff] %vm1132_vm5, %v1095_v34  ;;  %1183 = vrot.lane.b32.xlu1 %v1150_v35, %s1708_s15 }
 0x27a   :  { %v1099_v36 = vpop.permute.xlu1 %1098  ;;  %v1152_v37 = vld [vmem:[#allocation2 + $0x18] sm:$0xff] }
 0x27b   :  { %1140 = vst.msk [vmem:[#allocation2 + $0x38] sm:$0xff] %vm1132_vm5, %v1099_v36  ;;  %1187 = vrot.lane.b32.xlu1 %v1152_v37, %s1708_s15 }
 0x27e   :  { %v1103_v38 = vpop.permute.xlu1 %1102  ;;  %v1154_v39 = vld [vmem:[#allocation2 + $0x28] sm:$0xff] }
 0x27f   :  { %1142 = vst.msk [vmem:[#allocation2 + $0x48] sm:$0xff] %vm1132_vm5, %v1103_v38  ;;  %1191 = vrot.lane.b32.xlu1 %v1154_v39, %s1708_s15 }
 0x282   :  { %v1107_v40 = vpop.permute.xlu1 %1106  ;;  %v1156_v41 = vld [vmem:[#allocation2 + $0x38] sm:$0xff] }
 0x283   :  { %1144 = vst.msk [vmem:[#allocation2 + $0x58] sm:$0xff] %vm1132_vm5, %v1107_v40  ;;  %1195 = vrot.lane.b32.xlu1 %v1156_v41, %s1708_s15 }
 0x286   :  { %v1111_v42 = vpop.permute.xlu1 %1110  ;;  %v1158_v43 = vld [vmem:[#allocation2 + $0x48] sm:$0xff] }
 0x287   :  { %1146 = vst.msk [vmem:[#allocation2 + $0x68] sm:$0xff] %vm1132_vm5, %v1111_v42  ;;  %1199 = vrot.lane.b32.xlu1 %v1158_v43, %s1708_s15 }
 0x28a   :  { %v1115_v44 = vpop.permute.xlu1 %1114  ;;  %v1160_v45 = vld [vmem:[#allocation2 + $0x58] sm:$0xff] }
 0x28b   :  { %1148 = vst.msk [vmem:[#allocation2 + $0x78] sm:$0xff] %vm1132_vm5, %v1115_v44  ;;  %1203 = vrot.lane.b32.xlu1 %v1160_v45, %s1708_s15 }
 0x28e   :  { %v1162_v46 = vld [vmem:[#allocation2 + $0x68] sm:$0xff] }
 0x28f   :  { %1207 = vrot.lane.b32.xlu1 %v1162_v46, %s1708_s15 }
 0x292   :  { %v1164_v47 = vld [vmem:[#allocation2 + $0x78] sm:$0xff] }
 0x293   :  { %1211 = vrot.lane.b32.xlu1 %v1164_v47, %s1708_s15 }
 0x2ba   :  { %v1182_v48 = vpop.permute.xlu0 %1181 }
 0x2bb   :  { %1230 = vst.msk [vmem:[#allocation2] sm:$0xff] %vm1229_vm6, %v1182_v48 }
 0x2be   :  { %v1186_v49 = vpop.permute.xlu0 %1185 }
 0x2bf   :  { %1232 = vst.msk [vmem:[#allocation2 + $0x10] sm:$0xff] %vm1229_vm6, %v1186_v49 }
 0x2c2   :  { %v1190_v50 = vpop.permute.xlu0 %1189  ;;  %v1938_v51 = vld [vmem:[#allocation2] sm:$0xff] }
 0x2c3   :  { %1234 = vst.msk [vmem:[#allocation2 + $0x20] sm:$0xff] %vm1229_vm6, %v1190_v50  ;;  %v1942_v52 = vmul.f32 0.24420135, %v1938_v51  ;;  %v1374_v8 = vmul.f32 0.40261996, %v1938_v51 }
 0x2c4   :  { %v1262_v45 = vmul.f32 0.054488685, %v1938_v51 }
 0x2c5   :  { %1310 = vrot.lane.b32.xlu0 %v1942_v52, %s1709_s16 }
 0x2c6   :  { %v1194_v53 = vpop.permute.xlu0 %1193  ;;  %v1946_v54 = vld [vmem:[#allocation2 + $0x10] sm:$0xff] }
 0x2c7   :  { %1236 = vst.msk [vmem:[#allocation2 + $0x30] sm:$0xff] %vm1229_vm6, %v1194_v53  ;;  %v1950_v55 = vmul.f32 0.24420135, %v1946_v54  ;;  %v1376_v10 = vmul.f32 0.40261996, %v1946_v54 }
 0x2c8   :  { %v1264_v47 = vmul.f32 0.054488685, %v1946_v54 }
 0x2c9   :  { %1314 = vrot.lane.b32.xlu0 %v1950_v55, %s1709_s16 }
 0x2ca   :  { %v1198_v56 = vpop.permute.xlu0 %1197  ;;  %v1954_v57 = vld [vmem:[#allocation2 + $0x20] sm:$0xff] }
 0x2cb   :  { %1238 = vst.msk [vmem:[#allocation2 + $0x40] sm:$0xff] %vm1229_vm6, %v1198_v56  ;;  %v1958_v58 = vmul.f32 0.24420135, %v1954_v57  ;;  %v1378_v11 = vmul.f32 0.40261996, %v1954_v57 }
 0x2cc   :  { %v1266_v49 = vmul.f32 0.054488685, %v1954_v57 }
 0x2cd   :  { %1318 = vrot.lane.b32.xlu0 %v1958_v58, %s1709_s16 }
 0x2ce   :  { %v1202_v59 = vpop.permute.xlu0 %1201  ;;  %v1962_v60 = vld [vmem:[#allocation2 + $0x30] sm:$0xff] }
 0x2cf   :  { %1240 = vst.msk [vmem:[#allocation2 + $0x50] sm:$0xff] %vm1229_vm6, %v1202_v59  ;;  %v1966_v61 = vmul.f32 0.24420135, %v1962_v60  ;;  %v1380_v13 = vmul.f32 0.40261996, %v1962_v60 }
 0x2d0   :  { %v1268_v51 = vmul.f32 0.054488685, %v1962_v60 }
 0x2d1   :  { %1322 = vrot.lane.b32.xlu0 %v1966_v61, %s1709_s16 }
 0x2d2   :  { %v1206_v62 = vpop.permute.xlu0 %1205  ;;  %v1970_v63 = vld [vmem:[#allocation2 + $0x40] sm:$0xff] }
 0x2d3   :  { %1242 = vst.msk [vmem:[#allocation2 + $0x60] sm:$0xff] %vm1229_vm6, %v1206_v62  ;;  %v1974_v0 = vmul.f32 0.24420135, %v1970_v63  ;;  %v1382_v17 = vmul.f32 0.40261996, %v1970_v63 }
 0x2d5   :  { %1326 = vrot.lane.b32.xlu0 %v1974_v0, %s1709_s16 }
 0x2d6   :  { %v1210_v1 = vpop.permute.xlu0 %1209  ;;  %v1978_v2 = vld [vmem:[#allocation2 + $0x50] sm:$0xff] }
 0x2d7   :  { %1244 = vst.msk [vmem:[#allocation2 + $0x70] sm:$0xff] %vm1229_vm6, %v1210_v1  ;;  %v1982_v3 = vmul.f32 0.24420135, %v1978_v2  ;;  %v1384_v21 = vmul.f32 0.40261996, %v1978_v2 }
 0x2d8   :  { %v1272_v54 = vmul.f32 0.054488685, %v1978_v2 }
 0x2d9   :  { %1330 = vrot.lane.b32.xlu0 %v1982_v3, %s1709_s16 }
 0x2da   :  { %v1986_v4 = vld [vmem:[#allocation2 + $0x60] sm:$0xff] }
 0x2db   :  { %v1989_v5 = vmul.f32 0.24420135, %v1986_v4  ;;  %v1386_v25 = vmul.f32 0.40261996, %v1986_v4  ;;  %v1274_v57 = vmul.f32 0.054488685, %v1986_v4 }
 0x2dd   :  { %1334 = vrot.lane.b32.xlu0 %v1989_v5, %s1709_s16 }
 0x2de   :  { %v1993_v6 = vld [vmem:[#allocation2 + $0x70] sm:$0xff] }
 0x2df   :  { %v1996_v7 = vmul.f32 0.24420135, %v1993_v6  ;;  %v1388_v29 = vmul.f32 0.40261996, %v1993_v6  ;;  %v1276_v60 = vmul.f32 0.054488685, %v1993_v6 }
 0x2e1   :  { %1338 = vrot.lane.b32.xlu0 %v1996_v7, %s1709_s16 }
 0x2e5   :  { %1406 = vrot.lane.b32.xlu0 %v1374_v8, %s1707_s14 }
 0x2e9   :  { %v1184_v9 = vpop.permute.xlu1 %1183  ;;  %1410 = vrot.lane.b32.xlu0 %v1376_v10, %s1707_s14 }
 0x2ea   :  { %1231 = vst.msk [vmem:[#allocation2 + $0x8] sm:$0xff] %vm1229_vm6, %v1184_v9 }
 0x2ed   :  { %v1188_v12 = vpop.permute.xlu1 %1187  ;;  %1414 = vrot.lane.b32.xlu0 %v1378_v11, %s1707_s14 }
 0x2ee   :  { %1233 = vst.msk [vmem:[#allocation2 + $0x18] sm:$0xff] %vm1229_vm6, %v1188_v12 }
 0x2f1   :  { %v1192_v14 = vpop.permute.xlu1 %1191  ;;  %v2009_v15 = vld [vmem:[#allocation2 + $0x8] sm:$0xff]  ;;  %1418 = vrot.lane.b32.xlu0 %v1380_v13, %s1707_s14 }
 0x2f2   :  { %1235 = vst.msk [vmem:[#allocation2 + $0x28] sm:$0xff] %vm1229_vm6, %v1192_v14  ;;  %v2014_v16 = vmul.f32 0.24420135, %v2009_v15  ;;  %v1375_v40 = vmul.f32 0.40261996, %v2009_v15 }
 0x2f3   :  { %v1263_v6 = vmul.f32 0.054488685, %v2009_v15 }
 0x2f4   :  { %1312 = vrot.lane.b32.xlu1 %v2014_v16, %s1709_s16 }
 0x2f5   :  { %v1196_v18 = vpop.permute.xlu1 %1195  ;;  %v2019_v19 = vld [vmem:[#allocation2 + $0x18] sm:$0xff]  ;;  %1422 = vrot.lane.b32.xlu0 %v1382_v17, %s1707_s14 }
 0x2f6   :  { %1237 = vst.msk [vmem:[#allocation2 + $0x38] sm:$0xff] %vm1229_vm6, %v1196_v18  ;;  %v2024_v20 = vmul.f32 0.24420135, %v2019_v19  ;;  %v1377_v41 = vmul.f32 0.40261996, %v2019_v19 }
 0x2f7   :  { %v1265_v10 = vmul.f32 0.054488685, %v2019_v19 }
 0x2f8   :  { %1316 = vrot.lane.b32.xlu1 %v2024_v20, %s1709_s16 }
 0x2f9   :  { %v1200_v22 = vpop.permute.xlu1 %1199  ;;  %v2029_v23 = vld [vmem:[#allocation2 + $0x28] sm:$0xff]  ;;  %1426 = vrot.lane.b32.xlu0 %v1384_v21, %s1707_s14 }
 0x2fa   :  { %1239 = vst.msk [vmem:[#allocation2 + $0x48] sm:$0xff] %vm1229_vm6, %v1200_v22  ;;  %v2034_v24 = vmul.f32 0.24420135, %v2029_v23  ;;  %v1379_v42 = vmul.f32 0.40261996, %v2029_v23 }
 0x2fb   :  { %v1267_v11 = vmul.f32 0.054488685, %v2029_v23 }
 0x2fc   :  { %1320 = vrot.lane.b32.xlu1 %v2034_v24, %s1709_s16 }
 0x2fd   :  { %v1204_v26 = vpop.permute.xlu1 %1203  ;;  %v2039_v27 = vld [vmem:[#allocation2 + $0x38] sm:$0xff]  ;;  %1430 = vrot.lane.b32.xlu0 %v1386_v25, %s1707_s14 }
 0x2fe   :  { %1241 = vst.msk [vmem:[#allocation2 + $0x58] sm:$0xff] %vm1229_vm6, %v1204_v26  ;;  %v2044_v28 = vmul.f32 0.24420135, %v2039_v27  ;;  %v1381_v43 = vmul.f32 0.40261996, %v2039_v27 }
 0x2ff   :  { %v1269_v13 = vmul.f32 0.054488685, %v2039_v27 }
 0x300   :  { %1324 = vrot.lane.b32.xlu1 %v2044_v28, %s1709_s16 }
 0x301   :  { %v1208_v30 = vpop.permute.xlu1 %1207  ;;  %v2049_v31 = vld [vmem:[#allocation2 + $0x48] sm:$0xff]  ;;  %1434 = vrot.lane.b32.xlu0 %v1388_v29, %s1707_s14 }
 0x302   :  { %1243 = vst.msk [vmem:[#allocation2 + $0x68] sm:$0xff] %vm1229_vm6, %v1208_v30  ;;  %v2054_v32 = vmul.f32 0.24420135, %v2049_v31  ;;  %v1383_v44 = vmul.f32 0.40261996, %v2049_v31 }
 0x303   :  { %v1271_v15 = vmul.f32 0.054488685, %v2049_v31 }
 0x304   :  { %1328 = vrot.lane.b32.xlu1 %v2054_v32, %s1709_s16 }
 0x305   :  { %v1212_v33 = vpop.permute.xlu1 %1211  ;;  %v2058_v34 = vld [vmem:[#allocation2 + $0x58] sm:$0xff]  ;;  %1470 = vrot.lane.b32.xlu0 %v1942_v52, %s1710_s17  ;;  %v1270_v52 = vmul.f32 0.054488685, %v1970_v63 }
 0x306   :  { %1245 = vst.msk [vmem:[#allocation2 + $0x78] sm:$0xff] %vm1229_vm6, %v1212_v33  ;;  %v1289_v35 = vmul.f32 0.24420135, %v2058_v34  ;;  %v1385_v46 = vmul.f32 0.40261996, %v2058_v34 }
 0x307   :  { %v1273_v18 = vmul.f32 0.054488685, %v2058_v34 }
 0x308   :  { %1332 = vrot.lane.b32.xlu1 %v1289_v35, %s1709_s16 }
 0x309   :  { %v2065_v36 = vld [vmem:[#allocation2 + $0x68] sm:$0xff]  ;;  %1474 = vrot.lane.b32.xlu0 %v1950_v55, %s1710_s17 }
 0x30a   :  { %v1291_v37 = vmul.f32 0.24420135, %v2065_v36  ;;  %v1387_v48 = vmul.f32 0.40261996, %v2065_v36  ;;  %v1275_v22 = vmul.f32 0.054488685, %v2065_v36 }
 0x30c   :  { %1336 = vrot.lane.b32.xlu1 %v1291_v37, %s1709_s16 }
 0x30d   :  { %v2071_v38 = vld [vmem:[#allocation2 + $0x78] sm:$0xff]  ;;  %1478 = vrot.lane.b32.xlu0 %v1958_v58, %s1710_s17 }
 0x30e   :  { %v1293_v39 = vmul.f32 0.24420135, %v2071_v38  ;;  %v1389_v50 = vmul.f32 0.40261996, %v2071_v38  ;;  %v1277_v26 = vmul.f32 0.054488685, %v2071_v38 }
 0x310   :  { %1340 = vrot.lane.b32.xlu1 %v1293_v39, %s1709_s16 }
 0x311   :  { %1482 = vrot.lane.b32.xlu0 %v1966_v61, %s1710_s17 }
 0x314   :  { %1408 = vrot.lane.b32.xlu1 %v1375_v40, %s1707_s14 }
 0x315   :  { %1486 = vrot.lane.b32.xlu0 %v1974_v0, %s1710_s17 }
 0x318   :  { %1412 = vrot.lane.b32.xlu1 %v1377_v41, %s1707_s14 }
 0x319   :  { %1490 = vrot.lane.b32.xlu0 %v1982_v3, %s1710_s17 }
 0x31c   :  { %1416 = vrot.lane.b32.xlu1 %v1379_v42, %s1707_s14 }
 0x31d   :  { %1494 = vrot.lane.b32.xlu0 %v1989_v5, %s1710_s17 }
 0x320   :  { %1420 = vrot.lane.b32.xlu1 %v1381_v43, %s1707_s14 }
 0x321   :  { %1498 = vrot.lane.b32.xlu0 %v1996_v7, %s1710_s17 }
 0x324   :  { %1424 = vrot.lane.b32.xlu1 %v1383_v44, %s1707_s14 }
 0x325   :  { %1550 = vrot.lane.b32.xlu0 %v1262_v45, %s1706_s13 }
 0x328   :  { %1428 = vrot.lane.b32.xlu1 %v1385_v46, %s1707_s14 }
 0x329   :  { %1554 = vrot.lane.b32.xlu0 %v1264_v47, %s1706_s13 }
 0x32c   :  { %1432 = vrot.lane.b32.xlu1 %v1387_v48, %s1707_s14 }
 0x32d   :  { %1558 = vrot.lane.b32.xlu0 %v1266_v49, %s1706_s13 }
 0x330   :  { %1436 = vrot.lane.b32.xlu1 %v1389_v50, %s1707_s14 }
 0x331   :  { %1562 = vrot.lane.b32.xlu0 %v1268_v51, %s1706_s13 }
 0x334   :  { %1472 = vrot.lane.b32.xlu1 %v2014_v16, %s1710_s17 }
 0x335   :  { %1566 = vrot.lane.b32.xlu0 %v1270_v52, %s1706_s13 }
 0x337   :  { %v1311_v53 = vpop.permute.xlu0 %1310 }
 0x338   :  { %1476 = vrot.lane.b32.xlu1 %v2024_v20, %s1710_s17  ;;  %v2118_v55 = vadd.f32 %v1311_v53, %v1262_v45 }
 0x339   :  { %1570 = vrot.lane.b32.xlu0 %v1272_v54, %s1706_s13 }
 0x33b   :  { %v1315_v56 = vpop.permute.xlu0 %1314 }
 0x33c   :  { %1480 = vrot.lane.b32.xlu1 %v2034_v24, %s1710_s17  ;;  %v2124_v58 = vadd.f32 %v1315_v56, %v1264_v47 }
 0x33d   :  { %1574 = vrot.lane.b32.xlu0 %v1274_v57, %s1706_s13 }
 0x33f   :  { %v1319_v59 = vpop.permute.xlu0 %1318 }
 0x340   :  { %1484 = vrot.lane.b32.xlu1 %v2044_v28, %s1710_s17  ;;  %v2130_v61 = vadd.f32 %v1319_v59, %v1266_v49 }
 0x341   :  { %1578 = vrot.lane.b32.xlu0 %v1276_v60, %s1706_s13 }
 0x343   :  { %v1323_v62 = vpop.permute.xlu0 %1322 }
 0x344   :  { %1488 = vrot.lane.b32.xlu1 %v2054_v32, %s1710_s17  ;;  %v2135_v63 = vadd.f32 %v1323_v62, %v1268_v51 }
 0x347   :  { %v1327_v0 = vpop.permute.xlu0 %1326 }
 0x348   :  { %1492 = vrot.lane.b32.xlu1 %v1289_v35, %s1710_s17  ;;  %v2138_v1 = vadd.f32 %v1327_v0, %v1270_v52 }
 0x34b   :  { %v1331_v2 = vpop.permute.xlu0 %1330 }
 0x34c   :  { %1496 = vrot.lane.b32.xlu1 %v1291_v37, %s1710_s17  ;;  %v2141_v3 = vadd.f32 %v1331_v2, %v1272_v54 }
 0x34f   :  { %v1335_v4 = vpop.permute.xlu0 %1334 }
 0x350   :  { %1500 = vrot.lane.b32.xlu1 %v1293_v39, %s1710_s17  ;;  %v2144_v5 = vadd.f32 %v1335_v4, %v1274_v57 }
 0x353   :  { %v1339_v7 = vpop.permute.xlu0 %1338 }
 0x354   :  { %1552 = vrot.lane.b32.xlu1 %v1263_v6, %s1706_s13  ;;  %v2148_v8 = vadd.f32 %v1339_v7, %v1276_v60 }
 0x357   :  { %v1407_v9 = vpop.permute.xlu0 %1406 }
 0x358   :  { %1556 = vrot.lane.b32.xlu1 %v1265_v10, %s1706_s13  ;;  %v1454_v52 = vadd.f32 %v1407_v9, %v2118_v55 }
 0x35b   :  { %v1411_v12 = vpop.permute.xlu0 %1410 }
 0x35c   :  { %1560 = vrot.lane.b32.xlu1 %v1267_v11, %s1706_s13  ;;  %v1456_v57 = vadd.f32 %v1411_v12, %v2124_v58 }
 0x35f   :  { %v1415_v14 = vpop.permute.xlu0 %1414 }
 0x360   :  { %1564 = vrot.lane.b32.xlu1 %v1269_v13, %s1706_s13  ;;  %v1458_v2 = vadd.f32 %v1415_v14, %v2130_v61 }
 0x363   :  { %v1419_v16 = vpop.permute.xlu0 %1418 }
 0x364   :  { %1568 = vrot.lane.b32.xlu1 %v1271_v15, %s1706_s13 }
 0x366   :  { %v1313_v17 = vpop.permute.xlu1 %1312 }
 0x367   :  { %v2159_v19 = vadd.f32 %v1313_v17, %v1263_v6  ;;  %v1423_v20 = vpop.permute.xlu0 %1422 }
 0x368   :  { %1572 = vrot.lane.b32.xlu1 %v1273_v18, %s1706_s13 }
 0x36a   :  { %v1317_v21 = vpop.permute.xlu1 %1316 }
 0x36b   :  { %v2163_v23 = vadd.f32 %v1317_v21, %v1265_v10  ;;  %v1427_v24 = vpop.permute.xlu0 %1426  ;;  %v1460_v10 = vadd.f32 %v1419_v16, %v2135_v63 }
 0x36c   :  { %1576 = vrot.lane.b32.xlu1 %v1275_v22, %s1706_s13 }
 0x36e   :  { %v1321_v25 = vpop.permute.xlu1 %1320 }
 0x36f   :  { %v2167_v27 = vadd.f32 %v1321_v25, %v1267_v11  ;;  %v1431_v28 = vpop.permute.xlu0 %1430 }
 0x370   :  { %1580 = vrot.lane.b32.xlu1 %v1277_v26, %s1706_s13  ;;  %v1466_v25 = vadd.f32 %v1431_v28, %v2144_v5 }
 0x372   :  { %v1325_v29 = vpop.permute.xlu1 %1324 }
 0x373   :  { %v2170_v30 = vadd.f32 %v1325_v29, %v1269_v13  ;;  %v1435_v31 = vpop.permute.xlu0 %1434  ;;  %v1462_v13 = vadd.f32 %v1423_v20, %v2138_v1 }
 0x374   :  { %v1468_v20 = vadd.f32 %v1435_v31, %v2148_v8 }
 0x376   :  { %v1329_v32 = vpop.permute.xlu1 %1328 }
 0x377   :  { %v2172_v33 = vadd.f32 %v1329_v32, %v1271_v15  ;;  %v1471_v34 = vpop.permute.xlu0 %1470 }
 0x378   :  { %v1518_v53 = vadd.f32 %v1471_v34, %v1454_v52 }
 0x37a   :  { %v1333_v35 = vpop.permute.xlu1 %1332 }
 0x37b   :  { %v2174_v36 = vadd.f32 %v1333_v35, %v1273_v18  ;;  %v1475_v37 = vpop.permute.xlu0 %1474  ;;  %v1464_v18 = vadd.f32 %v1427_v24, %v2141_v3 }
 0x37c   :  { %v1520_v60 = vadd.f32 %v1475_v37, %v1456_v57 }
 0x37e   :  { %v1337_v39 = vpop.permute.xlu1 %1336 }
 0x37f   :  { %v2176_v40 = vadd.f32 %v1337_v39, %v1275_v22  ;;  %v1479_v38 = vpop.permute.xlu0 %1478 }
 0x380   :  { %v1522_v6 = vadd.f32 %v1479_v38, %v1458_v2 }
 0x382   :  { %v1341_v41 = vpop.permute.xlu1 %1340 }
 0x383   :  { %v2178_v42 = vadd.f32 %v1341_v41, %v1277_v26  ;;  %v1483_v43 = vpop.permute.xlu0 %1482 }
 0x384   :  { %v1524_v58 = vadd.f32 %v1483_v43, %v1460_v10 }
 0x386   :  { %v1409_v44 = vpop.permute.xlu1 %1408 }
 0x387   :  { %v1487_v45 = vpop.permute.xlu0 %1486  ;;  %v1455_v41 = vadd.f32 %v1409_v44, %v2159_v19 }
 0x388   :  { %v1526_v61 = vadd.f32 %v1487_v45, %v1462_v13 }
 0x38a   :  { %v1413_v46 = vpop.permute.xlu1 %1412 }
 0x38b   :  { %v1491_v47 = vpop.permute.xlu0 %1490 }
 0x38c   :  { %v1528_v22 = vadd.f32 %v1491_v47, %v1464_v18  ;;  %v1457_v47 = vadd.f32 %v1413_v46, %v2163_v23 }
 0x38e   :  { %v2180_v48 = vpop.permute.xlu1 %1416 }
 0x38f   :  { %v1495_v49 = vpop.permute.xlu0 %1494 }
 0x390   :  { %v1530_v29 = vadd.f32 %v1495_v49, %v1466_v25 }
 0x392   :  { %v2182_v50 = vpop.permute.xlu1 %1420 }
 0x393   :  { %v1499_v51 = vpop.permute.xlu0 %1498  ;;  %v1461_v19 = vadd.f32 %v2182_v50, %v2170_v30 }
 0x394   :  { %v1532_v35 = vadd.f32 %v1499_v51, %v1468_v20  ;;  %v1459_v51 = vadd.f32 %v2180_v48, %v2167_v27 }
 0x396   :  { %v2185_v54 = vpop.permute.xlu1 %1424 }
 0x397   :  { %v1551_v56 = vpop.permute.xlu0 %1550  ;;  %v1463_v46 = vadd.f32 %v2185_v54, %v2172_v33 }
 0x398   :  { %v1598_v59 = vadd.f32 %v1551_v56, %v1518_v53 }
 0x39a   :  { %v2188_v62 = vpop.permute.xlu1 %1428  ;;  %1615 = vst.msk [vmem:[#allocation6] sm:$0xff] %vm1614_vm7, %v1598_v59 }
 0x39b   :  { %v1555_v0 = vpop.permute.xlu0 %1554  ;;  %v1465_v48 = vadd.f32 %v2188_v62, %v2174_v36 }
 0x39c   :  { %v1600_v4 = vadd.f32 %v1555_v0, %v1520_v60 }
 0x39e   :  { %v2192_v7 = vpop.permute.xlu1 %1432  ;;  %1617 = vst.msk [vmem:[#allocation6 + $0x10] sm:$0xff] %vm1614_vm7, %v1600_v4 }
 0x39f   :  { %v1559_v55 = vpop.permute.xlu0 %1558  ;;  %v1467_v50 = vadd.f32 %v2192_v7, %v2176_v40 }
 0x3a0   :  { %v1602_v9 = vadd.f32 %v1559_v55, %v1522_v6 }
 0x3a2   :  { %v2196_v11 = vpop.permute.xlu1 %1436  ;;  %1619 = vst.msk [vmem:[#allocation6 + $0x20] sm:$0xff] %vm1614_vm7, %v1602_v9 }
 0x3a3   :  { %v1563_v12 = vpop.permute.xlu0 %1562  ;;  %v1469_v54 = vadd.f32 %v2196_v11, %v2178_v42 }
 0x3a4   :  { %v1604_v15 = vadd.f32 %v1563_v12, %v1524_v58 }
 0x3a6   :  { %v1473_v14 = vpop.permute.xlu1 %1472  ;;  %1621 = vst.msk [vmem:[#allocation6 + $0x30] sm:$0xff] %vm1614_vm7, %v1604_v15 }
 0x3a7   :  { %v1567_v17 = vpop.permute.xlu0 %1566  ;;  %v1519_v43 = vadd.f32 %v1473_v14, %v1455_v41 }
 0x3a8   :  { %v1606_v21 = vadd.f32 %v1567_v17, %v1526_v61 }
 0x3aa   :  { %v1477_v63 = vpop.permute.xlu1 %1476  ;;  %1623 = vst.msk [vmem:[#allocation6 + $0x40] sm:$0xff] %vm1614_vm7, %v1606_v21 }
 0x3ab   :  { %v1571_v16 = vpop.permute.xlu0 %1570  ;;  %v1521_v31 = vadd.f32 %v1477_v63, %v1457_v47 }
 0x3ac   :  { %v1608_v26 = vadd.f32 %v1571_v16, %v1528_v22 }
 0x3ae   :  { %v1481_v32 = vpop.permute.xlu1 %1480  ;;  %1625 = vst.msk [vmem:[#allocation6 + $0x50] sm:$0xff] %vm1614_vm7, %v1608_v26 }
 0x3af   :  { %v1575_v1 = vpop.permute.xlu0 %1574  ;;  %v1523_v53 = vadd.f32 %v1481_v32, %v1459_v51 }
 0x3b0   :  { %v1610_v34 = vadd.f32 %v1575_v1, %v1530_v29 }
 0x3b2   :  { %v1485_v37 = vpop.permute.xlu1 %1484  ;;  %1627 = vst.msk [vmem:[#allocation6 + $0x60] sm:$0xff] %vm1614_vm7, %v1610_v34 }
 0x3b3   :  { %v1579_v3 = vpop.permute.xlu0 %1578  ;;  %v1525_v57 = vadd.f32 %v1485_v37, %v1461_v19 }
 0x3b4   :  { %v1612_v24 = vadd.f32 %v1579_v3, %v1532_v35 }
 0x3b6   :  { %v1489_v39 = vpop.permute.xlu1 %1488  ;;  %1629 = vst.msk [vmem:[#allocation6 + $0x70] sm:$0xff] %vm1614_vm7, %v1612_v24 }
 0x3b7   :  { %v1527_v60 = vadd.f32 %v1489_v39, %v1463_v46 }
 0x3ba   :  { %v1493_v38 = vpop.permute.xlu1 %1492 }
 0x3bb   :  { %v1529_v2 = vadd.f32 %v1493_v38, %v1465_v48 }
 0x3be   :  { %v1497_v5 = vpop.permute.xlu1 %1496 }
 0x3bf   :  { %v1531_v6 = vadd.f32 %v1497_v5, %v1467_v50 }
 0x3c2   :  { %v1501_v28 = vpop.permute.xlu1 %1500 }
 0x3c3   :  { %v1533_v36 = vadd.f32 %v1501_v28, %v1469_v54 }
 0x3c6   :  { %v1553_v45 = vpop.permute.xlu1 %1552 }
 0x3c7   :  { %v1599_v8 = vadd.f32 %v1553_v45, %v1519_v43 }
 0x3c9   :  { %1616 = vst.msk [vmem:[#allocation6 + $0x8] sm:$0xff] %vm1614_vm7, %v1599_v8 }
 0x3ca   :  { %v1557_v49 = vpop.permute.xlu1 %1556 }
 0x3cb   :  { %v1601_v52 = vadd.f32 %v1557_v49, %v1521_v31 }
 0x3cd   :  { %1618 = vst.msk [vmem:[#allocation6 + $0x18] sm:$0xff] %vm1614_vm7, %v1601_v52 }
 0x3ce   :  { %v1561_v56 = vpop.permute.xlu1 %1560 }
 0x3cf   :  { %v1603_v44 = vadd.f32 %v1561_v56, %v1523_v53 }
 0x3d1   :  { %1620 = vst.msk [vmem:[#allocation6 + $0x28] sm:$0xff] %vm1614_vm7, %v1603_v44 }
 0x3d2   :  { %v1565_v23 = vpop.permute.xlu1 %1564 }
 0x3d3   :  { %v1605_v59 = vadd.f32 %v1565_v23, %v1525_v57 }
 0x3d5   :  { %1622 = vst.msk [vmem:[#allocation6 + $0x38] sm:$0xff] %vm1614_vm7, %v1605_v59 }
 0x3d6   :  { %v1569_v27 = vpop.permute.xlu1 %1568 }
 0x3d7   :  { %v1607_v0 = vadd.f32 %v1569_v27, %v1527_v60 }
 0x3d9   :  { %1624 = vst.msk [vmem:[#allocation6 + $0x48] sm:$0xff] %vm1614_vm7, %v1607_v0 }
 0x3da   :  { %v1573_v30 = vpop.permute.xlu1 %1572 }
 0x3db   :  { %v1609_v4 = vadd.f32 %v1573_v30, %v1529_v2 }
 0x3dd   :  { %1626 = vst.msk [vmem:[#allocation6 + $0x58] sm:$0xff] %vm1614_vm7, %v1609_v4 }
 0x3de   :  { %v1577_v33 = vpop.permute.xlu1 %1576 }
 0x3df   :  { %v1611_v55 = vadd.f32 %v1577_v33, %v1531_v6 }
 0x3e1   :  { %1628 = vst.msk [vmem:[#allocation6 + $0x68] sm:$0xff] %vm1614_vm7, %v1611_v55 }
 0x3e2   :  { %v1581_v62 = vpop.permute.xlu1 %1580 }
 0x3e3   :  { %v1613_v10 = vadd.f32 %v1581_v62, %v1533_v36 }
 0x3e5   :  { %1630 = vst.msk [vmem:[#allocation6 + $0x78] sm:$0xff] %vm1614_vm7, %v1613_v10 }
 0x3e6   :  { %1689 = shalt.err (!%p1686_p9)
}
 0x3e7   :  { %1642 = dma.vmem_to_hbm [thread:$0]  %s1637_s19, 2048, %s2237_s1, [#allocation5], %s1703_s9, %s1703_s9, %s1704_s10  }
 0x3e8   :  { %1700 = dma.done.wait [#allocation5], 2048  }
 0x3e9   :  { %1701 = vsyncadd [#allocation5], 4294965248 }
 0x3ea   :  { %1646 = vsyncpa [#allocation4], 1 }
 0x3eb   :  { %1647 = vsyncpa [#allocation5], 1 }

</bundles_post_ra>
